<compile_context>
chip_gen: v7x
topology: tpu7x:2x2x1
jax: 0.10.0
libtpu: 0.0.40
codegen_flags: <defaults>
</compile_context>

<pallas_src>
import functools

import jax
import jax.numpy as jnp
from jax.experimental import pallas as pl
from jax.experimental.pallas import tpu as pltpu

VMEM = pltpu.MemorySpace.VMEM
NEG_INF = -1e30


def _vmem_specs(n):
    return [pl.BlockSpec(memory_space=VMEM) for _ in range(n)]


# --------------------------- in-kernel building blocks ---------------------------

def _gat_layer(x, w, att_pack, bias, att_bias, *, heads, c):
    """One GATConv (concat heads) + bias + ReLU using a dense masked softmax.

    x: [N, Fin], w: [Fin, H*C], att_pack: [H*C, 2H] (per-head att_src/att_dst
    packed into block-arranged columns), bias: [1, H*C],
    att_bias: [N, N] additive mask (0 on edges incl. self loops, -1e30 elsewhere),
    rows = destination, cols = source.
    """
    xp = jnp.dot(x, w, preferred_element_type=jnp.float32)            # [N, H*C]
    # All per-head attention scalars in ONE MXU matmul (no XLU lane reductions).
    a_all = jnp.dot(xp, att_pack, preferred_element_type=jnp.float32)  # [N, 2H]
    outs = []
    for h in range(heads):
        lo = h * c
        xh = xp[:, lo:lo + c]                                          # [N, C]
        a_src = a_all[:, 2 * h:2 * h + 1]                              # [N, 1] node-as-source
        a_dst = a_all[:, 2 * h + 1:2 * h + 2]                          # [N, 1] node-as-dest
        e = a_dst + jnp.transpose(a_src)                               # [dst, src]
        e = jnp.maximum(e, 0.2 * e)                                    # leaky_relu(0.2), 1 VALU op
        e = e + att_bias                                               # sparse mask
        e = e - jnp.max(e, axis=-1, keepdims=True)
        p = jnp.exp(e)
        inv = pl.reciprocal(jnp.sum(p, axis=-1, keepdims=True), approx=True)
        p = p * inv                                                    # softmax over src
        outs.append(jnp.dot(p, xh, preferred_element_type=jnp.float32))  # [N, C]
    out = jnp.concatenate(outs, axis=-1) + bias
    return jnp.maximum(out, 0.0)                                       # relu()


def _batchnorm(x, gamma, beta, ones_row, eps):
    # TODO(synk): eval-mode BatchNorm (running stats) parity not implemented;
    # training-mode batch statistics (biased variance) are used.
    n = x.shape[0]
    inv_n = 1.0 / n
    s = jnp.dot(ones_row, x, preferred_element_type=jnp.float32)        # [1, F]
    ssq = jnp.dot(ones_row, x * x, preferred_element_type=jnp.float32)  # [1, F]
    mean = s * inv_n
    var = jnp.maximum(ssq * inv_n - mean * mean, 0.0)                   # clamp cancellation
    return (x - mean) * jax.lax.rsqrt(var + eps) * gamma + beta


# --------------------------- fused Pallas kernel ---------------------------

def fused_autoencoder_kernel(x_ref, mask_ref, src_oh_ref, dst_oh_ref,
                             w1_ref, a1_ref, b1_ref, g1_ref, be1_ref,
                             w2_ref, a2_ref, b2_ref, g2_ref, be2_ref,
                             w3_ref, a3_ref, b3_ref,
                             wl_ref, bl_ref, wf_ref, bf_ref,
                             adj_ref, node_ref, *,
                             heads, c1, c2, c3, eps):
    n = x_ref.shape[0]
    ones_row = jnp.ones((1, n), jnp.float32)
    m = mask_ref[...].astype(jnp.float32)        # bf16 mask read ONCE, widened in VMEM

    h = _gat_layer(x_ref[...], w1_ref[...], a1_ref[...], b1_ref[...], m,
                   heads=heads, c=c1)
    h = _batchnorm(h, g1_ref[...], be1_ref[...], ones_row, eps)
    h = _gat_layer(h, w2_ref[...], a2_ref[...], b2_ref[...], m,
                   heads=heads, c=c2)
    h = _batchnorm(h, g2_ref[...], be2_ref[...], ones_row, eps)
    h = _gat_layer(h, w3_ref[...], a3_ref[...], b3_ref[...], m,
                   heads=heads, c=c3)

    z = jnp.dot(h, wl_ref[...], preferred_element_type=jnp.float32) + bl_ref[...]   # [N, L]

    # Decoder node-feature reconstruction.
    node_ref[...] = (jnp.dot(z, wf_ref[...], preferred_element_type=jnp.float32)
                     + bf_ref[...])

    # Decoder adjacency reconstruction, fused: edge-wise inner product via
    # one-hot gather matmuls (no z round-trip, no separate kernel launch).
    z_src = jnp.dot(src_oh_ref[...], z, preferred_element_type=jnp.float32)  # [E, L]
    z_dst = jnp.dot(dst_oh_ref[...], z, preferred_element_type=jnp.float32)  # [E, L]
    val = jnp.sum(z_src * z_dst, axis=-1, keepdims=True)                     # [E, 1]
    adj_ref[...] = jax.nn.sigmoid(jnp.transpose(val))                        # [1, E] lane-dense


# --------------------------- parameter init (deterministic) ---------------------------

def init_gat_params(key, in_ch, out_per_head, heads):
    k1, k2, k3, k4 = jax.random.split(key, 4)
    scale = 1.0 / jnp.sqrt(jnp.float32(in_ch))
    hc = heads * out_per_head
    return dict(
        w_lin=jax.random.normal(k1, (in_ch, hc), jnp.float32) * scale,
        att_src=jax.random.normal(k2, (1, hc), jnp.float32) * 0.2,
        att_dst=jax.random.normal(k3, (1, hc), jnp.float32) * 0.2,
        bias=jax.random.normal(k4, (1, hc), jnp.float32) * 0.05,
    )


def init_linear_params(key, fin, fout):
    k1, k2 = jax.random.split(key)
    bound = 1.0 / (fin ** 0.5)
    return dict(
        w=jax.random.uniform(k1, (fin, fout), jnp.float32, -bound, bound),
        b=jax.random.uniform(k2, (1, fout), jnp.float32, -bound, bound),
    )


def init_model_params(key, in_channels, latent_dim, out_channels):
    ks = jax.random.split(key, 8)
    L = latent_dim
    return dict(
        conv1=init_gat_params(ks[0], in_channels, 2 * L, 2),    # -> [N, 4L]
        bn1_gamma=jnp.ones((1, 4 * L), jnp.float32),
        bn1_beta=jnp.zeros((1, 4 * L), jnp.float32),
        conv2=init_gat_params(ks[1], 4 * L, L, 2),               # -> [N, 2L]
        bn2_gamma=jnp.ones((1, 2 * L), jnp.float32),
        bn2_beta=jnp.zeros((1, 2 * L), jnp.float32),
        conv3=init_gat_params(ks[2], 2 * L, L, 2),               # -> [N, 2L]
        lin=init_linear_params(ks[3], 2 * L, L),                 # -> z [N, L]
        fc=init_linear_params(ks[4], L, out_channels),           # decoder fc
    )


def _pack_att(att_src, att_dst, heads, c):
    """Pack per-head att_src / att_dst ([1, H*C]) into A: [H*C, 2H] so that
    xp @ A yields [N, 2H] = all per-head (alpha_src, alpha_dst) scalars at once."""
    hc = heads * c
    a = jnp.zeros((hc, 2 * heads), jnp.float32)
    for h in range(heads):
        a = a.at[h * c:(h + 1) * c, 2 * h].set(att_src[0, h * c:(h + 1) * c])
        a = a.at[h * c:(h + 1) * c, 2 * h + 1].set(att_dst[0, h * c:(h + 1) * c])
    return a


# --------------------------- forward ---------------------------

def gat_autoencoder_forward(params, x, edge_index, latent_dim, out_channels):
    n = x.shape[0]
    src, dst = edge_index[0], edge_index[1]
    e_num = int(edge_index.shape[1])
    L = latent_dim

    # Additive attention bias built ONCE, in a single pass, stored in bf16
    # (-1e30 is representable in bf16; exp underflows to exactly 0 after rowmax):
    # 0 on edges (dst, src) + self loops, -1e30 elsewhere. Rows = destination.
    att_bias = (jnp.full((n, n), NEG_INF, jnp.bfloat16)
                .at[dst, src].set(0.0)
                .at[jnp.arange(n), jnp.arange(n)].set(0.0))

    # One-hot gather matrices for the fused edge-wise decoder.
    erange = jnp.arange(e_num)
    src_oh = jnp.zeros((e_num, n), jnp.float32).at[erange, src].set(1.0)
    dst_oh = jnp.zeros((e_num, n), jnp.float32).at[erange, dst].set(1.0)

    p = params
    a1 = _pack_att(p["conv1"]["att_src"], p["conv1"]["att_dst"], 2, 2 * L)
    a2 = _pack_att(p["conv2"]["att_src"], p["conv2"]["att_dst"], 2, L)
    a3 = _pack_att(p["conv3"]["att_src"], p["conv3"]["att_dst"], 2, L)

    kernel = functools.partial(fused_autoencoder_kernel, heads=2,
                               c1=2 * L, c2=L, c3=L, eps=1e-5)
    adj_row, node_recon = pl.pallas_call(
        kernel,
        out_shape=(jax.ShapeDtypeStruct((1, e_num), jnp.float32),
                   jax.ShapeDtypeStruct((n, out_channels), jnp.float32)),
        in_specs=_vmem_specs(21),
        out_specs=(pl.BlockSpec(memory_space=VMEM),
                   pl.BlockSpec(memory_space=VMEM)),
    )(x, att_bias, src_oh, dst_oh,
      p["conv1"]["w_lin"], a1, p["conv1"]["bias"], p["bn1_gamma"], p["bn1_beta"],
      p["conv2"]["w_lin"], a2, p["conv2"]["bias"], p["bn2_gamma"], p["bn2_beta"],
      p["conv3"]["w_lin"], a3, p["conv3"]["bias"],
      p["lin"]["w"], p["lin"]["b"], p["fc"]["w"], p["fc"]["b"])

    return adj_row[0], node_recon     # adj_recon: [E], node_recon: [N, out_channels]


# --------------------------- main ---------------------------

if __name__ == "__main__":
    N = 16
    in_channels, hidden_channels, latent_dim, out_channels = 4, 16, 8, 4
    # (hidden_channels is unused by the reference module's forward path as well.)

    key = jax.random.PRNGKey(0)
    k_params, k_x = jax.random.split(key)

    params = init_model_params(k_params, in_channels, latent_dim, out_channels)
    x = jax.random.normal(k_x, (N, in_channels), jnp.float32)

    # Deterministic, duplicate-free, self-loop-free edge set.
    edges = []
    for i in range(N):
        edges.append((i, (i + 1) % N))
        edges.append((i, (i + 3) % N))
    edge_index = jnp.array(edges, dtype=jnp.int32).T   # [2, E], E = 32

    adj_recon, node_recon = gat_autoencoder_forward(
        params, x, edge_index, latent_dim, out_channels)
    jax.block_until_ready((adj_recon, node_recon))

    assert adj_recon.shape == (edge_index.shape[1],)
    assert node_recon.shape == (N, out_channels)
    assert bool(jnp.all(jnp.isfinite(adj_recon))) and bool(jnp.all(jnp.isfinite(node_recon)))
    print("KERNEL_OK")
</pallas_src>

<mosaic_0001>
module attributes {stable_mosaic.version = 11 : i64} {
  func.func @fused_autoencoder_kernel(%arg0: memref<16x4xf32, #tpu.memory_space<vmem>>, %arg1: memref<16x16xbf16, #tpu.memory_space<vmem>>, %arg2: memref<32x16xf32, #tpu.memory_space<vmem>>, %arg3: memref<32x16xf32, #tpu.memory_space<vmem>>, %arg4: memref<4x32xf32, #tpu.memory_space<vmem>>, %arg5: memref<32x4xf32, #tpu.memory_space<vmem>>, %arg6: memref<1x32xf32, #tpu.memory_space<vmem>>, %arg7: memref<1x32xf32, #tpu.memory_space<vmem>>, %arg8: memref<1x32xf32, #tpu.memory_space<vmem>>, %arg9: memref<32x16xf32, #tpu.memory_space<vmem>>, %arg10: memref<16x4xf32, #tpu.memory_space<vmem>>, %arg11: memref<1x16xf32, #tpu.memory_space<vmem>>, %arg12: memref<1x16xf32, #tpu.memory_space<vmem>>, %arg13: memref<1x16xf32, #tpu.memory_space<vmem>>, %arg14: memref<16x16xf32, #tpu.memory_space<vmem>>, %arg15: memref<16x4xf32, #tpu.memory_space<vmem>>, %arg16: memref<1x16xf32, #tpu.memory_space<vmem>>, %arg17: memref<16x8xf32, #tpu.memory_space<vmem>>, %arg18: memref<1x8xf32, #tpu.memory_space<vmem>>, %arg19: memref<8x4xf32, #tpu.memory_space<vmem>>, %arg20: memref<1x4xf32, #tpu.memory_space<vmem>>, %arg21: memref<1x32xf32, #tpu.memory_space<vmem>>, %arg22: memref<16x4xf32, #tpu.memory_space<vmem>>) attributes {dimension_semantics = [], scalar_prefetch = 0 : i64, scratch_operands = 0 : i64, tpu.core_type = #tpu.core_type<tc>} {
    %cst = arith.constant 1.000000e+00 : f32
    %0 = vector.broadcast %cst : f32 to vector<1x16xf32>
    %c0 = arith.constant 0 : index
    %c0_0 = arith.constant 0 : index
    %1 = vector.load %arg1[%c0, %c0_0] : memref<16x16xbf16, #tpu.memory_space<vmem>>, vector<16x16xbf16>
    %2 = arith.extf %1 : vector<16x16xbf16> to vector<16x16xf32>
    %c0_1 = arith.constant 0 : index
    %c0_2 = arith.constant 0 : index
    %3 = vector.load %arg0[%c0_1, %c0_2] : memref<16x4xf32, #tpu.memory_space<vmem>>, vector<16x4xf32>
    %c0_3 = arith.constant 0 : index
    %c0_4 = arith.constant 0 : index
    %4 = vector.load %arg4[%c0_3, %c0_4] : memref<4x32xf32, #tpu.memory_space<vmem>>, vector<4x32xf32>
    %c0_5 = arith.constant 0 : index
    %c0_6 = arith.constant 0 : index
    %5 = vector.load %arg5[%c0_5, %c0_6] : memref<32x4xf32, #tpu.memory_space<vmem>>, vector<32x4xf32>
    %c0_7 = arith.constant 0 : index
    %c0_8 = arith.constant 0 : index
    %6 = vector.load %arg6[%c0_7, %c0_8] : memref<1x32xf32, #tpu.memory_space<vmem>>, vector<1x32xf32>
    %cst_9 = arith.constant dense<0.000000e+00> : vector<16x32xf32>
    %7 = tpu.matmul %3, %4, %cst_9 {dimension_numbers = #tpu.dot_dimension_numbers<[1], [0], [0], [1], [0, 0, 1, 1], [], []>} : vector<16x4xf32>, vector<4x32xf32>, vector<16x32xf32> -> vector<16x32xf32>
    %cst_10 = arith.constant dense<0.000000e+00> : vector<16x4xf32>
    %8 = tpu.matmul %7, %5, %cst_10 {dimension_numbers = #tpu.dot_dimension_numbers<[1], [0], [0], [1], [0, 0, 1, 1], [], []>} : vector<16x32xf32>, vector<32x4xf32>, vector<16x4xf32> -> vector<16x4xf32>
    %9 = vector.extract_strided_slice %7 {offsets = [0, 0], sizes = [16, 16], strides = [1, 1]} : vector<16x32xf32> to vector<16x16xf32>
    %10 = vector.extract_strided_slice %8 {offsets = [0, 0], sizes = [16, 1], strides = [1, 1]} : vector<16x4xf32> to vector<16x1xf32>
    %11 = vector.extract_strided_slice %8 {offsets = [0, 1], sizes = [16, 1], strides = [1, 1]} : vector<16x4xf32> to vector<16x1xf32>
    %12 = tpu.transpose %10, [1, 0] : vector<16x1xf32> -> vector<1x16xf32>
    %13 = vector.broadcast %11 : vector<16x1xf32> to vector<16x16xf32>
    %14 = vector.broadcast %12 : vector<1x16xf32> to vector<16x16xf32>
    %15 = arith.addf %13, %14 : vector<16x16xf32>
    %cst_11 = arith.constant 2.000000e-01 : f32
    %16 = vector.broadcast %cst_11 : f32 to vector<16x16xf32>
    %17 = arith.mulf %16, %15 : vector<16x16xf32>
    %18 = arith.maximumf %15, %17 : vector<16x16xf32>
    %19 = arith.addf %18, %2 : vector<16x16xf32>
    %cst_12 = arith.constant dense<0xFF800000> : vector<16xf32>
    %20 = vector.multi_reduction <maximumf>, %19, %cst_12 [1] : vector<16x16xf32> to vector<16xf32>
    %21 = vector.shape_cast %20 : vector<16xf32> to vector<16x1xf32>
    %22 = vector.broadcast %21 : vector<16x1xf32> to vector<16x16xf32>
    %23 = arith.subf %19, %22 : vector<16x16xf32>
    %24 = math.exp %23 : vector<16x16xf32>
    %cst_13 = arith.constant dense<0.000000e+00> : vector<16xf32>
    %25 = vector.multi_reduction <add>, %24, %cst_13 [1] : vector<16x16xf32> to vector<16xf32>
    %26 = vector.shape_cast %25 : vector<16xf32> to vector<16x1xf32>
    %27 = tpu.reciprocal %26 {approx = true} : vector<16x1xf32> -> vector<16x1xf32>
    %28 = vector.broadcast %27 : vector<16x1xf32> to vector<16x16xf32>
    %29 = arith.mulf %24, %28 : vector<16x16xf32>
    %cst_14 = arith.constant dense<0.000000e+00> : vector<16x16xf32>
    %30 = tpu.matmul %29, %9, %cst_14 {dimension_numbers = #tpu.dot_dimension_numbers<[1], [0], [0], [1], [0, 0, 1, 1], [], []>} : vector<16x16xf32>, vector<16x16xf32>, vector<16x16xf32> -> vector<16x16xf32>
    %31 = vector.extract_strided_slice %7 {offsets = [0, 16], sizes = [16, 16], strides = [1, 1]} : vector<16x32xf32> to vector<16x16xf32>
    %32 = vector.extract_strided_slice %8 {offsets = [0, 2], sizes = [16, 1], strides = [1, 1]} : vector<16x4xf32> to vector<16x1xf32>
    %33 = vector.extract_strided_slice %8 {offsets = [0, 3], sizes = [16, 1], strides = [1, 1]} : vector<16x4xf32> to vector<16x1xf32>
    %34 = tpu.transpose %32, [1, 0] : vector<16x1xf32> -> vector<1x16xf32>
    %35 = vector.broadcast %33 : vector<16x1xf32> to vector<16x16xf32>
    %36 = vector.broadcast %34 : vector<1x16xf32> to vector<16x16xf32>
    %37 = arith.addf %35, %36 : vector<16x16xf32>
    %cst_15 = arith.constant 2.000000e-01 : f32
    %38 = vector.broadcast %cst_15 : f32 to vector<16x16xf32>
    %39 = arith.mulf %38, %37 : vector<16x16xf32>
    %40 = arith.maximumf %37, %39 : vector<16x16xf32>
    %41 = arith.addf %40, %2 : vector<16x16xf32>
    %cst_16 = arith.constant dense<0xFF800000> : vector<16xf32>
    %42 = vector.multi_reduction <maximumf>, %41, %cst_16 [1] : vector<16x16xf32> to vector<16xf32>
    %43 = vector.shape_cast %42 : vector<16xf32> to vector<16x1xf32>
    %44 = vector.broadcast %43 : vector<16x1xf32> to vector<16x16xf32>
    %45 = arith.subf %41, %44 : vector<16x16xf32>
    %46 = math.exp %45 : vector<16x16xf32>
    %cst_17 = arith.constant dense<0.000000e+00> : vector<16xf32>
    %47 = vector.multi_reduction <add>, %46, %cst_17 [1] : vector<16x16xf32> to vector<16xf32>
    %48 = vector.shape_cast %47 : vector<16xf32> to vector<16x1xf32>
    %49 = tpu.reciprocal %48 {approx = true} : vector<16x1xf32> -> vector<16x1xf32>
    %50 = vector.broadcast %49 : vector<16x1xf32> to vector<16x16xf32>
    %51 = arith.mulf %46, %50 : vector<16x16xf32>
    %cst_18 = arith.constant dense<0.000000e+00> : vector<16x16xf32>
    %52 = tpu.matmul %51, %31, %cst_18 {dimension_numbers = #tpu.dot_dimension_numbers<[1], [0], [0], [1], [0, 0, 1, 1], [], []>} : vector<16x16xf32>, vector<16x16xf32>, vector<16x16xf32> -> vector<16x16xf32>
    %53 = tpu.concatenate %30, %52 in 1 : vector<16x16xf32>, vector<16x16xf32> -> vector<16x32xf32>
    %54 = vector.broadcast %6 : vector<1x32xf32> to vector<16x32xf32>
    %55 = arith.addf %53, %54 : vector<16x32xf32>
    %cst_19 = arith.constant 0.000000e+00 : f32
    %56 = vector.broadcast %cst_19 : f32 to vector<16x32xf32>
    %57 = arith.maximumf %55, %56 : vector<16x32xf32>
    %c0_20 = arith.constant 0 : index
    %c0_21 = arith.constant 0 : index
    %58 = vector.load %arg7[%c0_20, %c0_21] : memref<1x32xf32, #tpu.memory_space<vmem>>, vector<1x32xf32>
    %c0_22 = arith.constant 0 : index
    %c0_23 = arith.constant 0 : index
    %59 = vector.load %arg8[%c0_22, %c0_23] : memref<1x32xf32, #tpu.memory_space<vmem>>, vector<1x32xf32>
    %cst_24 = arith.constant dense<0.000000e+00> : vector<1x32xf32>
    %60 = tpu.matmul %0, %57, %cst_24 {dimension_numbers = #tpu.dot_dimension_numbers<[1], [0], [0], [1], [0, 0, 1, 1], [], []>} : vector<1x16xf32>, vector<16x32xf32>, vector<1x32xf32> -> vector<1x32xf32>
    %61 = arith.mulf %57, %57 : vector<16x32xf32>
    %cst_25 = arith.constant dense<0.000000e+00> : vector<1x32xf32>
    %62 = tpu.matmul %0, %61, %cst_25 {dimension_numbers = #tpu.dot_dimension_numbers<[1], [0], [0], [1], [0, 0, 1, 1], [], []>} : vector<1x16xf32>, vector<16x32xf32>, vector<1x32xf32> -> vector<1x32xf32>
    %cst_26 = arith.constant 6.250000e-02 : f32
    %63 = vector.broadcast %cst_26 : f32 to vector<1x32xf32>
    %64 = arith.mulf %60, %63 : vector<1x32xf32>
    %cst_27 = arith.constant 6.250000e-02 : f32
    %65 = vector.broadcast %cst_27 : f32 to vector<1x32xf32>
    %66 = arith.mulf %62, %65 : vector<1x32xf32>
    %67 = arith.mulf %64, %64 : vector<1x32xf32>
    %68 = arith.subf %66, %67 : vector<1x32xf32>
    %cst_28 = arith.constant 0.000000e+00 : f32
    %69 = vector.broadcast %cst_28 : f32 to vector<1x32xf32>
    %70 = arith.maximumf %68, %69 : vector<1x32xf32>
    %71 = vector.broadcast %64 : vector<1x32xf32> to vector<16x32xf32>
    %72 = arith.subf %57, %71 : vector<16x32xf32>
    %cst_29 = arith.constant 9.99999974E-6 : f32
    %73 = vector.broadcast %cst_29 : f32 to vector<1x32xf32>
    %74 = arith.addf %70, %73 : vector<1x32xf32>
    %75 = math.rsqrt %74 : vector<1x32xf32>
    %76 = vector.broadcast %75 : vector<1x32xf32> to vector<16x32xf32>
    %77 = arith.mulf %72, %76 : vector<16x32xf32>
    %78 = vector.broadcast %58 : vector<1x32xf32> to vector<16x32xf32>
    %79 = arith.mulf %77, %78 : vector<16x32xf32>
    %80 = vector.broadcast %59 : vector<1x32xf32> to vector<16x32xf32>
    %81 = arith.addf %79, %80 : vector<16x32xf32>
    %c0_30 = arith.constant 0 : index
    %c0_31 = arith.constant 0 : index
    %82 = vector.load %arg9[%c0_30, %c0_31] : memref<32x16xf32, #tpu.memory_space<vmem>>, vector<32x16xf32>
    %c0_32 = arith.constant 0 : index
    %c0_33 = arith.constant 0 : index
    %83 = vector.load %arg10[%c0_32, %c0_33] : memref<16x4xf32, #tpu.memory_space<vmem>>, vector<16x4xf32>
    %c0_34 = arith.constant 0 : index
    %c0_35 = arith.constant 0 : index
    %84 = vector.load %arg11[%c0_34, %c0_35] : memref<1x16xf32, #tpu.memory_space<vmem>>, vector<1x16xf32>
    %cst_36 = arith.constant dense<0.000000e+00> : vector<16x16xf32>
    %85 = tpu.matmul %81, %82, %cst_36 {dimension_numbers = #tpu.dot_dimension_numbers<[1], [0], [0], [1], [0, 0, 1, 1], [], []>} : vector<16x32xf32>, vector<32x16xf32>, vector<16x16xf32> -> vector<16x16xf32>
    %cst_37 = arith.constant dense<0.000000e+00> : vector<16x4xf32>
    %86 = tpu.matmul %85, %83, %cst_37 {dimension_numbers = #tpu.dot_dimension_numbers<[1], [0], [0], [1], [0, 0, 1, 1], [], []>} : vector<16x16xf32>, vector<16x4xf32>, vector<16x4xf32> -> vector<16x4xf32>
    %87 = vector.extract_strided_slice %85 {offsets = [0, 0], sizes = [16, 8], strides = [1, 1]} : vector<16x16xf32> to vector<16x8xf32>
    %88 = vector.extract_strided_slice %86 {offsets = [0, 0], sizes = [16, 1], strides = [1, 1]} : vector<16x4xf32> to vector<16x1xf32>
    %89 = vector.extract_strided_slice %86 {offsets = [0, 1], sizes = [16, 1], strides = [1, 1]} : vector<16x4xf32> to vector<16x1xf32>
    %90 = tpu.transpose %88, [1, 0] : vector<16x1xf32> -> vector<1x16xf32>
    %91 = vector.broadcast %89 : vector<16x1xf32> to vector<16x16xf32>
    %92 = vector.broadcast %90 : vector<1x16xf32> to vector<16x16xf32>
    %93 = arith.addf %91, %92 : vector<16x16xf32>
    %cst_38 = arith.constant 2.000000e-01 : f32
    %94 = vector.broadcast %cst_38 : f32 to vector<16x16xf32>
    %95 = arith.mulf %94, %93 : vector<16x16xf32>
    %96 = arith.maximumf %93, %95 : vector<16x16xf32>
    %97 = arith.addf %96, %2 : vector<16x16xf32>
    %cst_39 = arith.constant dense<0xFF800000> : vector<16xf32>
    %98 = vector.multi_reduction <maximumf>, %97, %cst_39 [1] : vector<16x16xf32> to vector<16xf32>
    %99 = vector.shape_cast %98 : vector<16xf32> to vector<16x1xf32>
    %100 = vector.broadcast %99 : vector<16x1xf32> to vector<16x16xf32>
    %101 = arith.subf %97, %100 : vector<16x16xf32>
    %102 = math.exp %101 : vector<16x16xf32>
    %cst_40 = arith.constant dense<0.000000e+00> : vector<16xf32>
    %103 = vector.multi_reduction <add>, %102, %cst_40 [1] : vector<16x16xf32> to vector<16xf32>
    %104 = vector.shape_cast %103 : vector<16xf32> to vector<16x1xf32>
    %105 = tpu.reciprocal %104 {approx = true} : vector<16x1xf32> -> vector<16x1xf32>
    %106 = vector.broadcast %105 : vector<16x1xf32> to vector<16x16xf32>
    %107 = arith.mulf %102, %106 : vector<16x16xf32>
    %cst_41 = arith.constant dense<0.000000e+00> : vector<16x8xf32>
    %108 = tpu.matmul %107, %87, %cst_41 {dimension_numbers = #tpu.dot_dimension_numbers<[1], [0], [0], [1], [0, 0, 1, 1], [], []>} : vector<16x16xf32>, vector<16x8xf32>, vector<16x8xf32> -> vector<16x8xf32>
    %109 = vector.extract_strided_slice %85 {offsets = [0, 8], sizes = [16, 8], strides = [1, 1]} : vector<16x16xf32> to vector<16x8xf32>
    %110 = vector.extract_strided_slice %86 {offsets = [0, 2], sizes = [16, 1], strides = [1, 1]} : vector<16x4xf32> to vector<16x1xf32>
    %111 = vector.extract_strided_slice %86 {offsets = [0, 3], sizes = [16, 1], strides = [1, 1]} : vector<16x4xf32> to vector<16x1xf32>
    %112 = tpu.transpose %110, [1, 0] : vector<16x1xf32> -> vector<1x16xf32>
    %113 = vector.broadcast %111 : vector<16x1xf32> to vector<16x16xf32>
    %114 = vector.broadcast %112 : vector<1x16xf32> to vector<16x16xf32>
    %115 = arith.addf %113, %114 : vector<16x16xf32>
    %cst_42 = arith.constant 2.000000e-01 : f32
    %116 = vector.broadcast %cst_42 : f32 to vector<16x16xf32>
    %117 = arith.mulf %116, %115 : vector<16x16xf32>
    %118 = arith.maximumf %115, %117 : vector<16x16xf32>
    %119 = arith.addf %118, %2 : vector<16x16xf32>
    %cst_43 = arith.constant dense<0xFF800000> : vector<16xf32>
    %120 = vector.multi_reduction <maximumf>, %119, %cst_43 [1] : vector<16x16xf32> to vector<16xf32>
    %121 = vector.shape_cast %120 : vector<16xf32> to vector<16x1xf32>
    %122 = vector.broadcast %121 : vector<16x1xf32> to vector<16x16xf32>
    %123 = arith.subf %119, %122 : vector<16x16xf32>
    %124 = math.exp %123 : vector<16x16xf32>
    %cst_44 = arith.constant dense<0.000000e+00> : vector<16xf32>
    %125 = vector.multi_reduction <add>, %124, %cst_44 [1] : vector<16x16xf32> to vector<16xf32>
    %126 = vector.shape_cast %125 : vector<16xf32> to vector<16x1xf32>
    %127 = tpu.reciprocal %126 {approx = true} : vector<16x1xf32> -> vector<16x1xf32>
    %128 = vector.broadcast %127 : vector<16x1xf32> to vector<16x16xf32>
    %129 = arith.mulf %124, %128 : vector<16x16xf32>
    %cst_45 = arith.constant dense<0.000000e+00> : vector<16x8xf32>
    %130 = tpu.matmul %129, %109, %cst_45 {dimension_numbers = #tpu.dot_dimension_numbers<[1], [0], [0], [1], [0, 0, 1, 1], [], []>} : vector<16x16xf32>, vector<16x8xf32>, vector<16x8xf32> -> vector<16x8xf32>
    %131 = tpu.concatenate %108, %130 in 1 : vector<16x8xf32>, vector<16x8xf32> -> vector<16x16xf32>
    %132 = vector.broadcast %84 : vector<1x16xf32> to vector<16x16xf32>
    %133 = arith.addf %131, %132 : vector<16x16xf32>
    %cst_46 = arith.constant 0.000000e+00 : f32
    %134 = vector.broadcast %cst_46 : f32 to vector<16x16xf32>
    %135 = arith.maximumf %133, %134 : vector<16x16xf32>
    %c0_47 = arith.constant 0 : index
    %c0_48 = arith.constant 0 : index
    %136 = vector.load %arg12[%c0_47, %c0_48] : memref<1x16xf32, #tpu.memory_space<vmem>>, vector<1x16xf32>
    %c0_49 = arith.constant 0 : index
    %c0_50 = arith.constant 0 : index
    %137 = vector.load %arg13[%c0_49, %c0_50] : memref<1x16xf32, #tpu.memory_space<vmem>>, vector<1x16xf32>
    %cst_51 = arith.constant dense<0.000000e+00> : vector<1x16xf32>
    %138 = tpu.matmul %0, %135, %cst_51 {dimension_numbers = #tpu.dot_dimension_numbers<[1], [0], [0], [1], [0, 0, 1, 1], [], []>} : vector<1x16xf32>, vector<16x16xf32>, vector<1x16xf32> -> vector<1x16xf32>
    %139 = arith.mulf %135, %135 : vector<16x16xf32>
    %cst_52 = arith.constant dense<0.000000e+00> : vector<1x16xf32>
    %140 = tpu.matmul %0, %139, %cst_52 {dimension_numbers = #tpu.dot_dimension_numbers<[1], [0], [0], [1], [0, 0, 1, 1], [], []>} : vector<1x16xf32>, vector<16x16xf32>, vector<1x16xf32> -> vector<1x16xf32>
    %cst_53 = arith.constant 6.250000e-02 : f32
    %141 = vector.broadcast %cst_53 : f32 to vector<1x16xf32>
    %142 = arith.mulf %138, %141 : vector<1x16xf32>
    %cst_54 = arith.constant 6.250000e-02 : f32
    %143 = vector.broadcast %cst_54 : f32 to vector<1x16xf32>
    %144 = arith.mulf %140, %143 : vector<1x16xf32>
    %145 = arith.mulf %142, %142 : vector<1x16xf32>
    %146 = arith.subf %144, %145 : vector<1x16xf32>
    %cst_55 = arith.constant 0.000000e+00 : f32
    %147 = vector.broadcast %cst_55 : f32 to vector<1x16xf32>
    %148 = arith.maximumf %146, %147 : vector<1x16xf32>
    %149 = vector.broadcast %142 : vector<1x16xf32> to vector<16x16xf32>
    %150 = arith.subf %135, %149 : vector<16x16xf32>
    %cst_56 = arith.constant 9.99999974E-6 : f32
    %151 = vector.broadcast %cst_56 : f32 to vector<1x16xf32>
    %152 = arith.addf %148, %151 : vector<1x16xf32>
    %153 = math.rsqrt %152 : vector<1x16xf32>
    %154 = vector.broadcast %153 : vector<1x16xf32> to vector<16x16xf32>
    %155 = arith.mulf %150, %154 : vector<16x16xf32>
    %156 = vector.broadcast %136 : vector<1x16xf32> to vector<16x16xf32>
    %157 = arith.mulf %155, %156 : vector<16x16xf32>
    %158 = vector.broadcast %137 : vector<1x16xf32> to vector<16x16xf32>
    %159 = arith.addf %157, %158 : vector<16x16xf32>
    %c0_57 = arith.constant 0 : index
    %c0_58 = arith.constant 0 : index
    %160 = vector.load %arg14[%c0_57, %c0_58] : memref<16x16xf32, #tpu.memory_space<vmem>>, vector<16x16xf32>
    %c0_59 = arith.constant 0 : index
    %c0_60 = arith.constant 0 : index
    %161 = vector.load %arg15[%c0_59, %c0_60] : memref<16x4xf32, #tpu.memory_space<vmem>>, vector<16x4xf32>
    %c0_61 = arith.constant 0 : index
    %c0_62 = arith.constant 0 : index
    %162 = vector.load %arg16[%c0_61, %c0_62] : memref<1x16xf32, #tpu.memory_space<vmem>>, vector<1x16xf32>
    %cst_63 = arith.constant dense<0.000000e+00> : vector<16x16xf32>
    %163 = tpu.matmul %159, %160, %cst_63 {dimension_numbers = #tpu.dot_dimension_numbers<[1], [0], [0], [1], [0, 0, 1, 1], [], []>} : vector<16x16xf32>, vector<16x16xf32>, vector<16x16xf32> -> vector<16x16xf32>
    %cst_64 = arith.constant dense<0.000000e+00> : vector<16x4xf32>
    %164 = tpu.matmul %163, %161, %cst_64 {dimension_numbers = #tpu.dot_dimension_numbers<[1], [0], [0], [1], [0, 0, 1, 1], [], []>} : vector<16x16xf32>, vector<16x4xf32>, vector<16x4xf32> -> vector<16x4xf32>
    %165 = vector.extract_strided_slice %163 {offsets = [0, 0], sizes = [16, 8], strides = [1, 1]} : vector<16x16xf32> to vector<16x8xf32>
    %166 = vector.extract_strided_slice %164 {offsets = [0, 0], sizes = [16, 1], strides = [1, 1]} : vector<16x4xf32> to vector<16x1xf32>
    %167 = vector.extract_strided_slice %164 {offsets = [0, 1], sizes = [16, 1], strides = [1, 1]} : vector<16x4xf32> to vector<16x1xf32>
    %168 = tpu.transpose %166, [1, 0] : vector<16x1xf32> -> vector<1x16xf32>
    %169 = vector.broadcast %167 : vector<16x1xf32> to vector<16x16xf32>
    %170 = vector.broadcast %168 : vector<1x16xf32> to vector<16x16xf32>
    %171 = arith.addf %169, %170 : vector<16x16xf32>
    %cst_65 = arith.constant 2.000000e-01 : f32
    %172 = vector.broadcast %cst_65 : f32 to vector<16x16xf32>
    %173 = arith.mulf %172, %171 : vector<16x16xf32>
    %174 = arith.maximumf %171, %173 : vector<16x16xf32>
    %175 = arith.addf %174, %2 : vector<16x16xf32>
    %cst_66 = arith.constant dense<0xFF800000> : vector<16xf32>
    %176 = vector.multi_reduction <maximumf>, %175, %cst_66 [1] : vector<16x16xf32> to vector<16xf32>
    %177 = vector.shape_cast %176 : vector<16xf32> to vector<16x1xf32>
    %178 = vector.broadcast %177 : vector<16x1xf32> to vector<16x16xf32>
    %179 = arith.subf %175, %178 : vector<16x16xf32>
    %180 = math.exp %179 : vector<16x16xf32>
    %cst_67 = arith.constant dense<0.000000e+00> : vector<16xf32>
    %181 = vector.multi_reduction <add>, %180, %cst_67 [1] : vector<16x16xf32> to vector<16xf32>
    %182 = vector.shape_cast %181 : vector<16xf32> to vector<16x1xf32>
    %183 = tpu.reciprocal %182 {approx = true} : vector<16x1xf32> -> vector<16x1xf32>
    %184 = vector.broadcast %183 : vector<16x1xf32> to vector<16x16xf32>
    %185 = arith.mulf %180, %184 : vector<16x16xf32>
    %cst_68 = arith.constant dense<0.000000e+00> : vector<16x8xf32>
    %186 = tpu.matmul %185, %165, %cst_68 {dimension_numbers = #tpu.dot_dimension_numbers<[1], [0], [0], [1], [0, 0, 1, 1], [], []>} : vector<16x16xf32>, vector<16x8xf32>, vector<16x8xf32> -> vector<16x8xf32>
    %187 = vector.extract_strided_slice %163 {offsets = [0, 8], sizes = [16, 8], strides = [1, 1]} : vector<16x16xf32> to vector<16x8xf32>
    %188 = vector.extract_strided_slice %164 {offsets = [0, 2], sizes = [16, 1], strides = [1, 1]} : vector<16x4xf32> to vector<16x1xf32>
    %189 = vector.extract_strided_slice %164 {offsets = [0, 3], sizes = [16, 1], strides = [1, 1]} : vector<16x4xf32> to vector<16x1xf32>
    %190 = tpu.transpose %188, [1, 0] : vector<16x1xf32> -> vector<1x16xf32>
    %191 = vector.broadcast %189 : vector<16x1xf32> to vector<16x16xf32>
    %192 = vector.broadcast %190 : vector<1x16xf32> to vector<16x16xf32>
    %193 = arith.addf %191, %192 : vector<16x16xf32>
    %cst_69 = arith.constant 2.000000e-01 : f32
    %194 = vector.broadcast %cst_69 : f32 to vector<16x16xf32>
    %195 = arith.mulf %194, %193 : vector<16x16xf32>
    %196 = arith.maximumf %193, %195 : vector<16x16xf32>
    %197 = arith.addf %196, %2 : vector<16x16xf32>
    %cst_70 = arith.constant dense<0xFF800000> : vector<16xf32>
    %198 = vector.multi_reduction <maximumf>, %197, %cst_70 [1] : vector<16x16xf32> to vector<16xf32>
    %199 = vector.shape_cast %198 : vector<16xf32> to vector<16x1xf32>
    %200 = vector.broadcast %199 : vector<16x1xf32> to vector<16x16xf32>
    %201 = arith.subf %197, %200 : vector<16x16xf32>
    %202 = math.exp %201 : vector<16x16xf32>
    %cst_71 = arith.constant dense<0.000000e+00> : vector<16xf32>
    %203 = vector.multi_reduction <add>, %202, %cst_71 [1] : vector<16x16xf32> to vector<16xf32>
    %204 = vector.shape_cast %203 : vector<16xf32> to vector<16x1xf32>
    %205 = tpu.reciprocal %204 {approx = true} : vector<16x1xf32> -> vector<16x1xf32>
    %206 = vector.broadcast %205 : vector<16x1xf32> to vector<16x16xf32>
    %207 = arith.mulf %202, %206 : vector<16x16xf32>
    %cst_72 = arith.constant dense<0.000000e+00> : vector<16x8xf32>
    %208 = tpu.matmul %207, %187, %cst_72 {dimension_numbers = #tpu.dot_dimension_numbers<[1], [0], [0], [1], [0, 0, 1, 1], [], []>} : vector<16x16xf32>, vector<16x8xf32>, vector<16x8xf32> -> vector<16x8xf32>
    %209 = tpu.concatenate %186, %208 in 1 : vector<16x8xf32>, vector<16x8xf32> -> vector<16x16xf32>
    %210 = vector.broadcast %162 : vector<1x16xf32> to vector<16x16xf32>
    %211 = arith.addf %209, %210 : vector<16x16xf32>
    %cst_73 = arith.constant 0.000000e+00 : f32
    %212 = vector.broadcast %cst_73 : f32 to vector<16x16xf32>
    %213 = arith.maximumf %211, %212 : vector<16x16xf32>
    %c0_74 = arith.constant 0 : index
    %c0_75 = arith.constant 0 : index
    %214 = vector.load %arg17[%c0_74, %c0_75] : memref<16x8xf32, #tpu.memory_space<vmem>>, vector<16x8xf32>
    %cst_76 = arith.constant dense<0.000000e+00> : vector<16x8xf32>
    %215 = tpu.matmul %213, %214, %cst_76 {dimension_numbers = #tpu.dot_dimension_numbers<[1], [0], [0], [1], [0, 0, 1, 1], [], []>} : vector<16x16xf32>, vector<16x8xf32>, vector<16x8xf32> -> vector<16x8xf32>
    %c0_77 = arith.constant 0 : index
    %c0_78 = arith.constant 0 : index
    %216 = vector.load %arg18[%c0_77, %c0_78] : memref<1x8xf32, #tpu.memory_space<vmem>>, vector<1x8xf32>
    %217 = vector.broadcast %216 : vector<1x8xf32> to vector<16x8xf32>
    %218 = arith.addf %215, %217 : vector<16x8xf32>
    %c0_79 = arith.constant 0 : index
    %c0_80 = arith.constant 0 : index
    %219 = vector.load %arg19[%c0_79, %c0_80] : memref<8x4xf32, #tpu.memory_space<vmem>>, vector<8x4xf32>
    %cst_81 = arith.constant dense<0.000000e+00> : vector<16x4xf32>
    %220 = tpu.matmul %218, %219, %cst_81 {dimension_numbers = #tpu.dot_dimension_numbers<[1], [0], [0], [1], [0, 0, 1, 1], [], []>} : vector<16x8xf32>, vector<8x4xf32>, vector<16x4xf32> -> vector<16x4xf32>
    %c0_82 = arith.constant 0 : index
    %c0_83 = arith.constant 0 : index
    %221 = vector.load %arg20[%c0_82, %c0_83] : memref<1x4xf32, #tpu.memory_space<vmem>>, vector<1x4xf32>
    %222 = vector.broadcast %221 : vector<1x4xf32> to vector<16x4xf32>
    %223 = arith.addf %220, %222 : vector<16x4xf32>
    %c0_84 = arith.constant 0 : index
    %c0_85 = arith.constant 0 : index
    %224 = vector.load %arg22[%c0_84, %c0_85] : memref<16x4xf32, #tpu.memory_space<vmem>>, vector<16x4xf32>
    tpu.vector_store %arg22[%c0_84, %c0_85], %223 {strides = array<i32>} : memref<16x4xf32, #tpu.memory_space<vmem>>, vector<16x4xf32>,
    %c0_86 = arith.constant 0 : index
    %c0_87 = arith.constant 0 : index
    %225 = vector.load %arg2[%c0_86, %c0_87] : memref<32x16xf32, #tpu.memory_space<vmem>>, vector<32x16xf32>
    %cst_88 = arith.constant dense<0.000000e+00> : vector<32x8xf32>
    %226 = tpu.matmul %225, %218, %cst_88 {dimension_numbers = #tpu.dot_dimension_numbers<[1], [0], [0], [1], [0, 0, 1, 1], [], []>} : vector<32x16xf32>, vector<16x8xf32>, vector<32x8xf32> -> vector<32x8xf32>
    %c0_89 = arith.constant 0 : index
    %c0_90 = arith.constant 0 : index
    %227 = vector.load %arg3[%c0_89, %c0_90] : memref<32x16xf32, #tpu.memory_space<vmem>>, vector<32x16xf32>
    %cst_91 = arith.constant dense<0.000000e+00> : vector<32x8xf32>
    %228 = tpu.matmul %227, %218, %cst_91 {dimension_numbers = #tpu.dot_dimension_numbers<[1], [0], [0], [1], [0, 0, 1, 1], [], []>} : vector<32x16xf32>, vector<16x8xf32>, vector<32x8xf32> -> vector<32x8xf32>
    %229 = arith.mulf %226, %228 : vector<32x8xf32>
    %cst_92 = arith.constant dense<0.000000e+00> : vector<32xf32>
    %230 = vector.multi_reduction <add>, %229, %cst_92 [1] : vector<32x8xf32> to vector<32xf32>
    %231 = vector.shape_cast %230 : vector<32xf32> to vector<32x1xf32>
    %232 = tpu.transpose %231, [1, 0] : vector<32x1xf32> -> vector<1x32xf32>
    %233 = arith.negf %232 : vector<1x32xf32>
    %234 = math.exp %233 : vector<1x32xf32>
    %cst_93 = arith.constant 1.000000e+00 : f32
    %235 = vector.broadcast %cst_93 : f32 to vector<1x32xf32>
    %236 = arith.addf %235, %234 : vector<1x32xf32>
    %237 = arith.divf %235, %236 : vector<1x32xf32>
    %c0_94 = arith.constant 0 : index
    %c0_95 = arith.constant 0 : index
    %238 = vector.load %arg21[%c0_94, %c0_95] : memref<1x32xf32, #tpu.memory_space<vmem>>, vector<1x32xf32>
    tpu.vector_store %arg21[%c0_94, %c0_95], %237 {strides = array<i32>} : memref<1x32xf32, #tpu.memory_space<vmem>>, vector<1x32xf32>,
    return
  }
}

</mosaic_0001>

<bundles_post_ra>
// kernel: tpu_custom_call.1
= control target key start
LH: loop header
LB: loop body
LE: loop exit
PB: predicated region body
PF: predicated region fallthrough
CT: control target
= control target key end

     0   :  { %s3355_s0 = inlined_call_operand.vmem [shape: f32[16,4], index: 0, kind: input, shape index: {}]   ;;  %s3356_s1 = inlined_call_operand.vmem [shape: bf16[16,16], index: 1, kind: input, shape index: {}]   ;;  %s3357_s2 = inlined_call_operand.vmem [shape: f32[32,16], index: 2, kind: input, shape index: {}]   ;;  %s3358_s3 = inlined_call_operand.vmem [shape: f32[32,16], index: 3, kind: input, shape index: {}]   ;;  %s3359_s4 = inlined_call_operand.vmem [shape: f32[4,32], index: 4, kind: input, shape index: {}]   ;;  %s3360_s5 = inlined_call_operand.vmem [shape: f32[32,4], index: 5, kind: input, shape index: {}]   ;;  %s3361_s6 = inlined_call_operand.vmem [shape: f32[1,32], index: 6, kind: input, shape index: {}]   ;;  %s3362_s7 = inlined_call_operand.vmem [shape: f32[1,32], index: 7, kind: input, shape index: {}]   ;;  %s3363_s8 = inlined_call_operand.vmem [shape: f32[1,32], index: 8, kind: input, shape index: {}]   ;;  %s3364_s9 = inlined_call_operand.vmem [shape: f32[32,16], index: 9, kind: input, shape index: {}]   ;;  %s3365_s10 = inlined_call_operand.vmem [shape: f32[16,4], index: 10, kind: input, shape index: {}]   ;;  %s3366_s11 = inlined_call_operand.vmem [shape: f32[1,16], index: 11, kind: input, shape index: {}]   ;;  %s3367_s12 = inlined_call_operand.vmem [shape: f32[1,16], index: 12, kind: input, shape index: {}]   ;;  %s3368_s13 = inlined_call_operand.vmem [shape: f32[1,16], index: 13, kind: input, shape index: {}]   ;;  %s3369_s14 = inlined_call_operand.vmem [shape: f32[16,16], index: 14, kind: input, shape index: {}]   ;;  %s3370_s15 = inlined_call_operand.vmem [shape: f32[16,4], index: 15, kind: input, shape index: {}]   ;;  %s3371_s16 = inlined_call_operand.vmem [shape: f32[1,16], index: 16, kind: input, shape index: {}]   ;;  %s3372_s17 = inlined_call_operand.vmem [shape: f32[16,8], index: 17, kind: input, shape index: {}]   ;;  %s3373_s18 = inlined_call_operand.vmem [shape: f32[1,8], index: 18, kind: input, shape index: {}]   ;;  %s3374_s19 = inlined_call_operand.vmem [shape: f32[8,4], index: 19, kind: input, shape index: {}]   ;;  %s3375_s20 = inlined_call_operand.vmem [shape: f32[1,4], index: 20, kind: input, shape index: {}]   ;;  %s3376_s21 = inlined_call_operand.hbm [shape: f32[1,32], index: 21, kind: output, shape index: {0}]   ;;  %s3377_s22 = inlined_call_operand.vmem [shape: f32[16,4], index: 22, kind: output, shape index: {1}]  }
   0x1   :  { %3382 = sst [smem:[#allocation5_spill]] %s3355_s0 }
   0x2   :  { %3383 = sst [smem:[#allocation6_spill]] %s3356_s1 }
   0x3   :  { %3384 = sst [smem:[#allocation7_spill]] %s3357_s2 }
   0x4   :  { %3385 = sst [smem:[#allocation8_spill]] %s3358_s3 }
   0x5   :  { %3386 = sst [smem:[#allocation9_spill]] %s3359_s4 }
   0x6   :  { %3387 = sst [smem:[#allocation10_spill]] %s3360_s5 }
   0x7   :  { %3388 = sst [smem:[#allocation11_spill]] %s3361_s6 }
   0x8   :  { %s3389_s29 = sld [smem:[#allocation9_spill]]  ;;  %vm90_vm0 = vcmask 1043456   ;;  %s3390_s0 = sld [smem:[#allocation5_spill]]  ;;  %vm83_vm1 = vcmask 31744  }
   0x9   :  { %s3391_s6 = sld [smem:[#allocation10_spill]] }
   0xe   :  { %v77_v0 = vld [vmem:[%s3389_s29] sm:$0xf]  ;;  %v76_v2 = vld [vmem:[%s3390_s0 + $0x8] sm:$0xff] }
   0xf   :  { %v75_v1 = vld [vmem:[%s3390_s0] sm:$0xff]  ;;  %2576 = vmatprep.subr.msk.mxu0 %vm90_vm0, %v77_v0  ;;  %v79_v4 = vld [vmem:[%s3391_s6 + $0x8] sm:$0xff]  ;;  %v80_v5 = vld [vmem:[%s3391_s6 + $0x10] sm:$0xff] }
  0x10   :  { %2578 = vmatprep.mubr.msk.f32.mxu0 %vm83_vm1, %v75_v1  ;;  %v78_v3 = vld [vmem:[%s3391_s6] sm:$0xff]  ;;  %2577 = vmatpush3.msk.msra.mxu0 %vm90_vm0, %v77_v0  ;;  %v81_v7 = vld [vmem:[%s3391_s6 + $0x18] sm:$0xff] }
  0x11   :  { %v2726_v6 = vpack.c.bf16 %v79_v4, %v78_v3 }
  0x12   :  { %28 = vsyncpa [#allocation3], 0  ;;  %2579 = vmatmul.mubr.msk.f32.vlgmr.msra.gmra.mrb[0].mxu0 %vm83_vm1, %v76_v2  ;;  %v2730_v8 = vpack.c.bf16 %v81_v7, %v80_v5  ;;  %v2917_v9 = vmov 1   ;;  %vm169_vm2 = vcmask 261120   ;;  %v2918_v14 = vmov 3   ;;  %s2919_s29 = smov 126  }
  0x13   :  { %2727 = vmatprep.subr.bf16.mxu1 %v2726_v6  ;;  %2814 = vset.pattern.permute.xlu1 %v2917_v9  ;;  %v293_v20 = vlaneseq  ;;  %s3392_s0 = sld [smem:[#allocation6_spill]]  ;;  %vm305_vm3 = vcmask 130048   ;;  %s2920_s23 = smov 112   ;;  %vm2922_vm4 = vmmov 0   ;;  %vm1279_vm5 = vcmask 64512  }
  0x14   :  { %2729 = vmatpush3.bf16.msra.mxu1 %v2726_v6  ;;  %2817 = vset.pattern.permute.xlu0 %v2918_v14  ;;  %s2924_s1 = smov 16   ;;  %s3393_s6 = sld [smem:[#allocation11_spill]]  ;;  %vm2419_vm6 = vcmask 253952  }
  0x15   :  { %2731 = vmatprep.subr.bf16.mxu1 %v2730_v8  ;;  %v294_v22 = vshrl.u32 %v293_v20, 7 }
  0x17   :  { %v3086_v24 = vsub.s32 0, %v294_v22 }
  0x18   :  { %2733 = vmatpush3.bf16.msra.mxu1 %v2730_v8 }
  0x19   :  { %v2491_v27 = vld [vmem:[%s3392_s0] sm:$0xff]  }
  0x1a   :  { %v3092_v32 = vunpack.c.h.bf16 %v2491_v27  ;;  %v3094_v33 = vunpack.c.l.bf16 %v2491_v27 }
  0xe5   :  { %v3068_v10 = vpop.f32.mrb[0].mxu0 }
  0xe6   :  { %v3070_v11 = vpop.f32.mrb[1].mxu0 }
  0xe7   :  { %v2818_v12 = vpack.i.bf16 %v3068_v10, %v3070_v11  ;;  %v2734_v13 = vpack.c.bf16 %v3068_v10, %v3070_v11  ;;  %2589 = vmatprep.mubr.msk.f32.mxu1 %vm169_vm2, %v3070_v11 }
  0xe8   :  { %2590 = vmatmul.mubr.msk.f32.vlgmr.msra.gmra.mrb[0].mxu1 %vm169_vm2, %v3068_v10 }
  0xe9   :  { %2735 = vmatprep.subr.bf16.mxu0 %v2734_v13 }
  0xea   :  { %2737 = vmatpush3.bf16.msra.mxu0 %v2734_v13 }
 0x1bb   :  { %v2591_v15 = vpop.f32.mrb[0].mxu1 }
 0x1bc   :  { %290 = vperm.xlu1 %2814, %v2591_v15   ;;  %v242_v16 = vpop.f32.mrb[1].mxu1 }
 0x1bd   :  { %409 = vrot.lane.b32.xlu0 %v242_v16, %s2919_s29 }
 0x1c0   :  { %2815 = vset.pattern.permute.xlu1 %v2918_v14 }
 0x1c1   :  { %452 = vperm.xlu1 %2815, %v2591_v15   ;;  %411 = vrot.lane.b32.xlu0 %v2591_v15, %s2919_s29 }
 0x1c5   :  { %2816 = vset.pattern.permute.xlu1 %v2917_v9  ;;  %448 = vperm.xlu0 %2817, %v242_v16  }
 0x1c6   :  { %285 = vperm.xlu1 %2816, %v242_v16  }
 0x1ef   :  { %251 = vxpose.xlu1.b32.start [1/2] (short) (narrow) %v242_v16, 8 }
 0x1f3   :  { %252 = vxpose.xlu1.b32.end [2/2] (short) (narrow) %v2591_v15, 8 }
 0x211   :  { %2823 = vset.pattern.permute.xlu1 %v2918_v14 }
 0x22f   :  { %v410_v17 = vpop.permute.xlu0 %409 }
 0x230   :  { %415 = vxpose.xlu0.b32.start [1/2] (short) (narrow) %v410_v17, 8 }
 0x233   :  { %v412_v18 = vpop.permute.xlu0 %411 }
 0x234   :  { %416 = vxpose.xlu0.b32.end [2/2] (short) (narrow) %v412_v18, 8 }
 0x23b   :  { %v291_v19 = vpop.permute.xlu1 %290 }
 0x240   :  { %v453_v21 = vpop.permute.xlu1 %452 }
 0x244   :  { %v449_v40 = vpop.permute.xlu0 %448 }
 0x245   :  { %v286_v23 = vpop.permute.xlu1 %285 }
 0x26f   :  { %v267_v25 = vpop.trf.xlu1 }
 0x270   :  { %v296_v26 = vrot.slane %v267_v25, %v3086_v24 }
 0x272   :  { %v297_v28 = vadd.f32 %v296_v26, %v286_v23  ;;  %v298_v29 = vadd.f32 %v296_v26, %v291_v19 }
 0x274   :  { %v299_v30 = vmul.f32 0.2, %v297_v28  ;;  %v300_v31 = vmul.f32 0.2, %v298_v29 }
 0x276   :  { %v302_v34 = vmax.f32 %v298_v29, %v300_v31  ;;  %v301_v35 = vmax.f32 %v297_v28, %v299_v30  ;;  %v2921_v30 = vmov 0.0|0.0  }
 0x277   :  { %2742 = vmatprep.subr.bf16.mxu1 %v2921_v30 }
 0x278   :  { %v304_v36 = vadd.f32 %v3092_v32, %v302_v34  ;;  %v303_v37 = vadd.f32 %v3094_v33, %v301_v35  ;;  %v2923_v35 = vmov 0.0  }
 0x279   :  { %2610 = vmatprep.mubr.msk.f32.mxu1 %vm2922_vm4, %v2923_v35 }
 0x27a   :  { %v309_v38 = vsel %vm305_vm3, %v304_v36, -inf  ;;  %v306_v39 = vsel %vm305_vm3, %v303_v37, -inf }
 0x27b   :  { %310 = vmax.xlane.f32.xlu1 %v309_v38  ;;  %307 = vmax.xlane.f32.xlu0 %v306_v39 }
 0x2b0   :  { %v431_v41 = vpop.trf.xlu0 }
 0x2b1   :  { %v458_v42 = vrot.slane %v431_v41, %v3086_v24 }
 0x2b3   :  { %v459_v43 = vadd.f32 %v458_v42, %v449_v40  ;;  %v460_v44 = vadd.f32 %v458_v42, %v453_v21 }
 0x2b5   :  { %v461_v45 = vmul.f32 0.2, %v459_v43  ;;  %v462_v46 = vmul.f32 0.2, %v460_v44 }
 0x2b7   :  { %v464_v47 = vmax.f32 %v460_v44, %v462_v46  ;;  %v463_v48 = vmax.f32 %v459_v43, %v461_v45 }
 0x2b9   :  { %v466_v49 = vadd.f32 %v3092_v32, %v464_v47  ;;  %v465_v50 = vadd.f32 %v3094_v33, %v463_v48 }
 0x2bb   :  { %v470_v51 = vsel %vm305_vm3, %v466_v49, -inf  ;;  %v467_v52 = vsel %vm305_vm3, %v465_v50, -inf }
 0x2bc   :  { %471 = vmax.xlane.f32.xlu1 %v470_v51  ;;  %468 = vmax.xlane.f32.xlu0 %v467_v52  ;;  %v779_v51 = vld [vmem:[%s3364_s9 + $0x8] sm:$0xff]  ;;  %v780_v52 = vld [vmem:[%s3364_s9 + $0x10] sm:$0xff] }
 0x308   :  { %v311_v53 = vpop.xlane.xlu1 %310  ;;  %v308_v54 = vpop.xlane.xlu0 %307 }
 0x309   :  { %v313_v55 = vsub.f32 %v304_v36, %v311_v53  ;;  %v312_v56 = vsub.f32 %v303_v37, %v308_v54  ;;  %v2448_v36 = vld [vmem:[%s3393_s6] ss:$0 sm:$0xff]  ;;  %v781_v54 = vld [vmem:[%s3364_s9 + $0x18] sm:$0xff] }
 0x30b   :  { %v316_v57 = vmul.f32 1.442695, %v313_v55  ;;  %v314_v58 = vmul.f32 1.442695, %v312_v56  ;;  %v2752_v55 = vpack.c.bf16 %v781_v54, %v780_v52  ;;  %v782_v56 = vld [vmem:[%s3365_s10] sm:$0xff] }
 0x30d   :  { %2837 = vpow2.f32 %v316_v57  ;;  %v783_v57 = vld [vmem:[%s3365_s10 + $0x8] sm:$0xff] }
 0x30e   :  { %2839 = vpow2.f32 %v314_v58  ;;  %v2756_v58 = vpack.c.bf16 %v783_v57, %v782_v56 }
 0x317   :  { %v2838_v59 = vpop.eup %2837 }
 0x318   :  { %v2840_v60 = vpop.eup %2839  ;;  %v321_v61 = vsel %vm305_vm3, %v2838_v59, 0.0 }
 0x319   :  { %322 = vadd.xlane.f32.xlu1 %v321_v61  ;;  %v318_v62 = vsel %vm305_vm3, %v2840_v60, 0.0 }
 0x31a   :  { %319 = vadd.xlane.f32.xlu0 %v318_v62 }
 0x349   :  { %v472_v63 = vpop.xlane.xlu1 %471  ;;  %v469_v0 = vpop.xlane.xlu0 %468 }
 0x34a   :  { %v474_v1 = vsub.f32 %v466_v49, %v472_v63  ;;  %v473_v2 = vsub.f32 %v465_v50, %v469_v0  ;;  %v2925_v49 = vmov 1.0   ;;  %v778_v50 = vld [vmem:[%s3364_s9] sm:$0xff] }
 0x34b   :  { %v2748_v53 = vpack.c.bf16 %v779_v51, %v778_v50 }
 0x34c   :  { %v477_v3 = vmul.f32 1.442695, %v474_v1  ;;  %v475_v4 = vmul.f32 1.442695, %v473_v2 }
 0x34e   :  { %2841 = vpow2.f32 %v477_v3 }
 0x34f   :  { %2843 = vpow2.f32 %v475_v4 }
 0x358   :  { %v2842_v5 = vpop.eup %2841 }
 0x359   :  { %v2844_v6 = vpop.eup %2843  ;;  %v482_v7 = vsel %vm305_vm3, %v2842_v5, 0.0 }
 0x35a   :  { %483 = vadd.xlane.f32.xlu1 %v482_v7  ;;  %v479_v8 = vsel %vm305_vm3, %v2844_v6, 0.0 }
 0x35b   :  { %480 = vadd.xlane.f32.xlu0 %v479_v8 }
 0x371   :  { %2819 = vrot.lane.b32.xlu0 %v2818_v12, %s2920_s23 }
 0x3a6   :  { %v323_v13 = vpop.xlane.xlu1 %322 }
 0x3a7   :  { %2845 = vrcp.f32 %v323_v13  ;;  %v320_v15 = vpop.xlane.xlu0 %319 }
 0x3a8   :  { %2847 = vrcp.f32 %v320_v15  ;;  %v2451_v15 = vld [vmem:[%s3362_s7] ss:$0 sm:$0xff]  ;;  %s2926_s7 = smov 120  }
 0x3b1   :  { %v2846_v16 = vpop.eup %2845 }
 0x3b2   :  { %v2848_v17 = vpop.eup %2847  ;;  %v327_v18 = vmul.f32 %v2846_v16, %v2838_v59 }
 0x3b3   :  { %v326_v19 = vmul.f32 %v2848_v17, %v2840_v60 }
 0x3b5   :  { %2596 = vmatprep.mubr.msk.f32.mxu0 %vm305_vm3, %v326_v19 }
 0x3b6   :  { %2597 = vmatmul.mubr.msk.f32.vlgmr.msra.gmra.mrb[2].mxu0 %vm305_vm3, %v327_v18  ;;  %v2452_v18 = vld [vmem:[%s3363_s8] ss:$0 sm:$0xff]  ;;  %s2927_s8 = smov 8  }
 0x3e7   :  { %v484_v20 = vpop.xlane.xlu1 %483 }
 0x3e8   :  { %2849 = vrcp.f32 %v484_v20  ;;  %v481_v21 = vpop.xlane.xlu0 %480 }
 0x3e9   :  { %2851 = vrcp.f32 %v481_v21 }
 0x3ec   :  { %v2820_v22 = vpop.permute.xlu0 %2819 }
 0x3ed   :  { %v2822_v23 = vunpack.i.h.bf16 %v2820_v22  ;;  %v2821_v10 = vunpack.i.l.bf16 %v2820_v22 }
 0x3ef   :  { %v2738_v11 = vpack.c.bf16 %v2822_v23, %v2821_v10 }
 0x3f1   :  { %2739 = vmatprep.subr.bf16.mxu0 %v2738_v11 }
 0x3f2   :  { %v2850_v12 = vpop.eup %2849  ;;  %2741 = vmatpush3.bf16.msra.mxu0 %v2738_v11 }
 0x3f3   :  { %v2852_v25 = vpop.eup %2851  ;;  %v488_v26 = vmul.f32 %v2850_v12, %v2842_v5  ;;  %2745 = vmatprep.subr.bf16.mxu0 %v2921_v30 }
 0x3f4   :  { %v487_v27 = vmul.f32 %v2852_v25, %v2844_v6 }
 0x3f6   :  { %2603 = vmatprep.mubr.msk.f32.mxu0 %vm305_vm3, %v487_v27 }
 0x3f7   :  { %2604 = vmatmul.mubr.msk.f32.vlgmr.msra.gmra.mrb[4].mxu0 %vm305_vm3, %v488_v26 }
 0x3f8   :  { %2617 = vmatprep.mubr.msk.f32.mxu0 %vm2922_vm4, %v2923_v35 }
 0x489   :  { %v2598_v28 = vpop.f32.mrb[2].mxu0 }
 0x48a   :  { %v400_v29 = vpop.f32.mrb[3].mxu0 }
 0x4ca   :  { %v2605_v31 = vpop.f32.mrb[4].mxu0 }
 0x4cb   :  { %v567_v34 = vpop.f32.mrb[5].mxu0 }
 0x4cc   :  { %578 = vrot.lane.b32.xlu1 %v567_v34, %s2924_s1 }
 0x4d0   :  { %580 = vrot.lane.b32.xlu1 %v2605_v31, %s2924_s1 }
 0x53e   :  { %v579_v37 = vpop.permute.xlu1 %578 }
 0x53f   :  { %v584_v38 = vsel %vm305_vm3, %v400_v29, %v579_v37 }
 0x540   :  { %v592_v39 = vadd.f32 %v2448_v36, %v584_v38 }
 0x542   :  { %v581_v40 = vpop.permute.xlu1 %580  ;;  %v594_v42 = vmax.f32 %v592_v39, 0.0 }
 0x543   :  { %v585_v41 = vsel %vm305_vm3, %v2598_v28, %v581_v40 }
 0x544   :  { %v593_v43 = vadd.f32 %v2448_v36, %v585_v41  ;;  %v671_v45 = vmul.f32 %v594_v42, %v594_v42 }
 0x546   :  { %v595_v44 = vmax.f32 %v593_v43, 0.0 }
 0x548   :  { %v672_v46 = vmul.f32 %v595_v44, %v595_v44  ;;  %v2743_v47 = vpack.c.bf16 %v595_v44, %v594_v42 }
 0x54a   :  { %2744 = vmatpush3.bf16.msra.mxu1 %v2743_v47  ;;  %v2746_v48 = vpack.c.bf16 %v672_v46, %v671_v45 }
 0x54b   :  { %2749 = vmatprep.subr.bf16.mxu1 %v2748_v53 }
 0x54c   :  { %2747 = vmatpush3.bf16.msra.mxu0 %v2746_v48 }
 0x54d   :  { %2611 = vmatmul.mubr.msk.f32.vlgmr.msra.gmra.mrb[2].mxu1 %vm305_vm3, %v2925_v49  ;;  %2757 = vmatprep.subr.bf16.mxu0 %v2756_v58 }
 0x54e   :  { %2751 = vmatpush3.bf16.msra.mxu1 %v2748_v53 }
 0x54f   :  { %2618 = vmatmul.mubr.msk.f32.vlgmr.msra.gmra.mrb[6].mxu0 %vm305_vm3, %v2925_v49  ;;  %2753 = vmatprep.subr.bf16.mxu1 %v2752_v55 }
 0x550   :  { %2759 = vmatpush3.bf16.msra.mxu0 %v2756_v58 }
 0x552   :  { %2755 = vmatpush3.bf16.msra.mxu1 %v2752_v55 }
 0x620   :  { %v667_v59 = vpop.f32.mrb[2].mxu1 }
 0x621   :  { %v743_v60 = vmul.f32 0.0625, %v667_v59  ;;  %v2612_v61 = vpop.f32.mrb[3].mxu1 }
 0x622   :  { %v739_v62 = vpop.f32.mrb[6].mxu0 }
 0x623   :  { %v745_v63 = vmul.f32 %v743_v60, %v743_v60  ;;  %v744_v0 = vmul.f32 0.0625, %v739_v62  ;;  %v2619_v1 = vpop.f32.mrb[7].mxu0  ;;  %v751_v5 = vrot.slane %v743_v60, %v3086_v24 }
 0x625   :  { %v746_v2 = vsub.f32 %v744_v0, %v745_v63  ;;  %v752_v7 = vsub.f32 %v594_v42, %v751_v5  ;;  %v753_v8 = vsub.f32 %v595_v44, %v751_v5 }
 0x627   :  { %v747_v3 = vmax.f32 %v746_v2, 0.0 }
 0x629   :  { %v754_v4 = vadd.f32 1e-05, %v747_v3 }
 0x62b   :  { %2853 = vrsqrt.f32 %v754_v4 }
 0x635   :  { %v2854_v6 = vpop.eup %2853 }
 0x636   :  { %v759_v13 = vrot.slane %v2854_v6, %v3086_v24 }
 0x638   :  { %v760_v16 = vmul.f32 %v759_v13, %v752_v7  ;;  %v761_v17 = vmul.f32 %v759_v13, %v753_v8 }
 0x63a   :  { %v768_v19 = vmul.f32 %v2451_v15, %v760_v16  ;;  %v769_v20 = vmul.f32 %v2451_v15, %v761_v17 }
 0x63c   :  { %v776_v21 = vadd.f32 %v2452_v18, %v768_v19  ;;  %v777_v22 = vadd.f32 %v2452_v18, %v769_v20 }
 0x63e   :  { %2628 = vmatprep.mubr.msk.f32.mxu1 %vm169_vm2, %v776_v21 }
 0x63f   :  { %2629 = vmatmul.mubr.msk.f32.vlgmr.msra.gmra.mrb[4].mxu1 %vm169_vm2, %v777_v22 }
 0x712   :  { %v3159_v23 = vpop.f32.mrb[4].mxu1 }
 0x713   :  { %v3161_v10 = vpop.f32.mrb[5].mxu1 }
 0x714   :  { %v2825_v11 = vpack.i.bf16 %v3159_v23, %v3161_v10  ;;  %v2760_v12 = vpack.c.bf16 %v3159_v23, %v3161_v10  ;;  %2635 = vmatprep.mubr.msk.f32.mxu0 %vm305_vm3, %v3161_v10 }
 0x715   :  { %2636 = vmatmul.mubr.msk.f32.vlgmr.msra.gmra.mrb[8].mxu0 %vm305_vm3, %v3159_v23 }
 0x716   :  { %2761 = vmatprep.subr.bf16.mxu0 %v2760_v12 }
 0x717   :  { %2763 = vmatpush3.bf16.msra.mxu0 %v2760_v12 }
 0x718   :  { %2768 = vmatprep.subr.bf16.mxu0 %v2921_v30 }
 0x7e8   :  { %v2637_v25 = vpop.f32.mrb[8].mxu0 }
 0x7e9   :  { %1106 = vrot.lane.b32.xlu1 %v2637_v25, %s2919_s29  ;;  %v938_v26 = vpop.f32.mrb[9].mxu0 }
 0x7ea   :  { %1104 = vrot.lane.b32.xlu0 %v938_v26, %s2919_s29 }
 0x7ed   :  { %1147 = vperm.xlu1 %2823, %v2637_v25  }
 0x7ee   :  { %1143 = vperm.xlu0 %2817, %v938_v26  }
 0x7f1   :  { %2824 = vset.pattern.permute.xlu1 %v2917_v9 }
 0x7f2   :  { %981 = vperm.xlu1 %2824, %v938_v26  }
 0x7f6   :  { %986 = vperm.xlu1 %2824, %v2637_v25  }
 0x85b   :  { %v1107_v28 = vpop.permute.xlu1 %1106 }
 0x85c   :  { %v1105_v27 = vpop.permute.xlu0 %1104 }
 0x85d   :  { %1110 = vxpose.xlu0.b32.start [1/2] (short) (narrow) %v1105_v27, 8 }
 0x861   :  { %1111 = vxpose.xlu0.b32.end [2/2] (short) (narrow) %v1107_v28, 8 }
 0x86c   :  { %v1148_v36 = vpop.permute.xlu1 %1147 }
 0x86d   :  { %v1144_v29 = vpop.permute.xlu0 %1143 }
 0x871   :  { %v982_v47 = vpop.permute.xlu1 %981 }
 0x875   :  { %v987_v48 = vpop.permute.xlu1 %986 }
 0x8dd   :  { %v1126_v31 = vpop.trf.xlu0 }
 0x8de   :  { %v1153_v34 = vrot.slane %v1126_v31, %v3086_v24 }
 0x8e0   :  { %v1154_v37 = vadd.f32 %v1153_v34, %v1144_v29  ;;  %v1155_v38 = vadd.f32 %v1153_v34, %v1148_v36 }
 0x8e2   :  { %v1156_v39 = vmul.f32 0.2, %v1154_v37  ;;  %v1157_v40 = vmul.f32 0.2, %v1155_v38 }
 0x8e4   :  { %v1159_v41 = vmax.f32 %v1155_v38, %v1157_v40  ;;  %v1158_v42 = vmax.f32 %v1154_v37, %v1156_v39 }
 0x8e6   :  { %v1161_v43 = vadd.f32 %v3092_v32, %v1159_v41  ;;  %v1160_v44 = vadd.f32 %v3094_v33, %v1158_v42  ;;  %v2461_v41 = vld [vmem:[%s3366_s11] ss:$0 sm:$0xff]  ;;  %s3395_s11 = sld [smem:[#allocation8_spill]] }
 0x8e8   :  { %v1165_v45 = vsel %vm305_vm3, %v1161_v43, -inf  ;;  %v1162_v46 = vsel %vm305_vm3, %v1160_v44, -inf }
 0x8e9   :  { %1166 = vmax.xlane.f32.xlu0 %v1165_v45  ;;  %1163 = vmax.xlane.f32.xlu1 %v1162_v46 }
 0x91c   :  { %947 = vxpose.xlu1.b32.start [1/2] (short) (narrow) %v938_v26, 8 }
 0x920   :  { %948 = vxpose.xlu1.b32.end [2/2] (short) (narrow) %v2637_v25, 8 }
 0x93e   :  { %2830 = vset.pattern.permute.xlu1 %v2918_v14 }
 0x976   :  { %v1164_v50 = vpop.xlane.xlu1 %1163  ;;  %v1167_v52 = vpop.xlane.xlu0 %1166 }
 0x977   :  { %v1168_v51 = vsub.f32 %v1160_v44, %v1164_v50  ;;  %v1169_v55 = vsub.f32 %v1161_v43, %v1167_v52 }
 0x979   :  { %v1170_v56 = vmul.f32 1.442695, %v1168_v51  ;;  %v1172_v61 = vmul.f32 1.442695, %v1169_v55 }
 0x97b   :  { %2855 = vpow2.f32 %v1170_v56  ;;  %v1471_v56 = vld [vmem:[%s3369_s14] sm:$0xff] }
 0x97c   :  { %2857 = vpow2.f32 %v1172_v61 }
 0x985   :  { %v2856_v3 = vpop.eup %2855 }
 0x986   :  { %v1174_v4 = vsel %vm305_vm3, %v2856_v3, 0.0  ;;  %v2858_v5 = vpop.eup %2857 }
 0x987   :  { %v1177_v6 = vsel %vm305_vm3, %v2858_v5, 0.0 }
 0x99c   :  { %v963_v53 = vpop.trf.xlu1 }
 0x99d   :  { %v992_v54 = vrot.slane %v963_v53, %v3086_v24 }
 0x99f   :  { %v993_v57 = vadd.f32 %v992_v54, %v982_v47  ;;  %v994_v58 = vadd.f32 %v992_v54, %v987_v48 }
 0x9a1   :  { %v995_v59 = vmul.f32 0.2, %v993_v57  ;;  %v996_v60 = vmul.f32 0.2, %v994_v58 }
 0x9a3   :  { %v997_v62 = vmax.f32 %v993_v57, %v995_v59  ;;  %v998_v63 = vmax.f32 %v994_v58, %v996_v60  ;;  %v1472_v57 = vld [vmem:[%s3369_s14 + $0x8] sm:$0xff]  ;;  %v1473_v59 = vld [vmem:[%s3370_s15] sm:$0xff] }
 0x9a4   :  { %v2774_v58 = vpack.c.bf16 %v1472_v57, %v1471_v56  ;;  %v1474_v60 = vld [vmem:[%s3370_s15 + $0x8] sm:$0xff] }
 0x9a5   :  { %v999_v14 = vadd.f32 %v3094_v33, %v997_v62  ;;  %v1000_v1 = vadd.f32 %v3092_v32, %v998_v63 }
 0x9a7   :  { %v1001_v0 = vsel %vm305_vm3, %v999_v14, -inf  ;;  %v1004_v2 = vsel %vm305_vm3, %v1000_v1, -inf }
 0x9a8   :  { %1002 = vmax.xlane.f32.xlu0 %v1001_v0 }
 0x9ac   :  { %1005 = vmax.xlane.f32.xlu0 %v1004_v2 }
 0x9b0   :  { %1175 = vadd.xlane.f32.xlu0 %v1174_v4 }
 0x9b4   :  { %1178 = vadd.xlane.f32.xlu0 %v1177_v6 }
 0x9ca   :  { %2826 = vrot.lane.b32.xlu0 %v2825_v11, %s2926_s7 }
 0xa35   :  { %v1003_v7 = vpop.xlane.xlu0 %1002 }
 0xa36   :  { %v1007_v8 = vsub.f32 %v999_v14, %v1003_v7 }
 0xa38   :  { %v1009_v13 = vmul.f32 1.442695, %v1007_v8 }
 0xa39   :  { %v1006_v15 = vpop.xlane.xlu0 %1005 }
 0xa3a   :  { %2859 = vpow2.f32 %v1009_v13  ;;  %v1008_v16 = vsub.f32 %v1000_v1, %v1006_v15 }
 0xa3c   :  { %v1011_v17 = vmul.f32 1.442695, %v1008_v16  ;;  %v2464_v16 = vld [vmem:[%s3367_s12] ss:$0 sm:$0xff] }
 0xa3d   :  { %v1176_v18 = vpop.xlane.xlu0 %1175 }
 0xa3e   :  { %2861 = vpow2.f32 %v1011_v17 }
 0xa3f   :  { %2863 = vrcp.f32 %v1176_v18 }
 0xa41   :  { %v1179_v19 = vpop.xlane.xlu0 %1178 }
 0xa42   :  { %2865 = vrcp.f32 %v1179_v19  ;;  %v2465_v19 = vld [vmem:[%s3368_s13] ss:$0 sm:$0xff] }
 0xa44   :  { %v2860_v20 = vpop.eup %2859 }
 0xa45   :  { %v2827_v21 = vpop.permute.xlu0 %2826  ;;  %v1013_v22 = vsel %vm305_vm3, %v2860_v20, 0.0 }
 0xa46   :  { %v2829_v12 = vunpack.i.h.bf16 %v2827_v21  ;;  %v2828_v25 = vunpack.i.l.bf16 %v2827_v21  ;;  %1014 = vadd.xlane.f32.xlu1 %v1013_v22 }
 0xa48   :  { %v2862_v23 = vpop.eup %2861  ;;  %v2764_v10 = vpack.c.bf16 %v2829_v12, %v2828_v25 }
 0xa49   :  { %v2864_v11 = vpop.eup %2863  ;;  %v1016_v26 = vsel %vm305_vm3, %v2862_v23, 0.0 }
 0xa4a   :  { %1017 = vadd.xlane.f32.xlu0 %v1016_v26  ;;  %2765 = vmatprep.subr.bf16.mxu1 %v2764_v10  ;;  %v1182_v27 = vmul.f32 %v2864_v11, %v2856_v3 }
 0xa4b   :  { %2767 = vmatpush3.bf16.msra.mxu1 %v2764_v10 }
 0xa4c   :  { %v2866_v28 = vpop.eup %2865  ;;  %2649 = vmatprep.mubr.msk.f32.mxu1 %vm305_vm3, %v1182_v27  ;;  %2771 = vmatprep.subr.bf16.mxu1 %v2921_v30 }
 0xa4d   :  { %v1183_v29 = vmul.f32 %v2866_v28, %v2858_v5 }
 0xa4f   :  { %2650 = vmatmul.mubr.msk.f32.vlgmr.msra.gmra.mrb[6].mxu1 %vm305_vm3, %v1183_v29 }
 0xa50   :  { %2663 = vmatprep.mubr.msk.f32.mxu1 %vm2922_vm4, %v2923_v35 }
 0xad3   :  { %v1015_v31 = vpop.xlane.xlu1 %1014 }
 0xad4   :  { %2867 = vrcp.f32 %v1015_v31 }
 0xad7   :  { %v1018_v34 = vpop.xlane.xlu0 %1017 }
 0xad8   :  { %2869 = vrcp.f32 %v1018_v34 }
 0xade   :  { %v2868_v36 = vpop.eup %2867 }
 0xadf   :  { %v1021_v37 = vmul.f32 %v2868_v36, %v2860_v20 }
 0xae1   :  { %2642 = vmatprep.mubr.msk.f32.mxu0 %vm305_vm3, %v1021_v37 }
 0xae2   :  { %v2870_v38 = vpop.eup %2869 }
 0xae3   :  { %v1022_v39 = vmul.f32 %v2870_v38, %v2862_v23 }
 0xae5   :  { %2643 = vmatmul.mubr.msk.f32.vlgmr.msra.gmra.mrb[10].mxu0 %vm305_vm3, %v1022_v39 }
 0xae6   :  { %2656 = vmatprep.mubr.msk.f32.mxu0 %vm2922_vm4, %v2923_v35 }
 0xb22   :  { %v2651_v30 = vpop.f32.mrb[6].mxu1 }
 0xb23   :  { %1275 = vrot.lane.b32.xlu0 %v2651_v30, %s2927_s8  ;;  %v1262_v40 = vpop.f32.mrb[7].mxu1 }
 0xb24   :  { %1273 = vrot.lane.b32.xlu1 %v1262_v40, %s2927_s8 }
 0xb95   :  { %v1276_v42 = vpop.permute.xlu0 %1275 }
 0xb96   :  { %v1274_v44 = vpop.permute.xlu1 %1273 }
 0xbb8   :  { %v2644_v43 = vpop.f32.mrb[10].mxu0 }
 0xbb9   :  { %v1281_v45 = vsel %vm1279_vm5, %v2644_v43, %v1276_v42  ;;  %v1095_v46 = vpop.f32.mrb[11].mxu0 }
 0xbba   :  { %v1289_v47 = vadd.f32 %v2461_v41, %v1281_v45  ;;  %v1280_v35 = vsel %vm1279_vm5, %v1095_v46, %v1274_v44 }
 0xbbb   :  { %v1288_v48 = vadd.f32 %v2461_v41, %v1280_v35 }
 0xbbc   :  { %v1291_v50 = vmax.f32 %v1289_v47, 0.0 }
 0xbbd   :  { %v1290_v51 = vmax.f32 %v1288_v48, 0.0 }
 0xbbe   :  { %v1365_v52 = vmul.f32 %v1291_v50, %v1291_v50 }
 0xbbf   :  { %v1364_v53 = vmul.f32 %v1290_v51, %v1290_v51  ;;  %v2769_v54 = vpack.c.bf16 %v1291_v50, %v1290_v51 }
 0xbc1   :  { %2770 = vmatpush3.bf16.msra.mxu0 %v2769_v54  ;;  %v2772_v55 = vpack.c.bf16 %v1365_v52, %v1364_v53 }
 0xbc2   :  { %2775 = vmatprep.subr.bf16.mxu0 %v2774_v58 }
 0xbc3   :  { %2773 = vmatpush3.bf16.msra.mxu1 %v2772_v55 }
 0xbc4   :  { %2657 = vmatmul.mubr.msk.f32.vlgmr.msra.gmra.mrb[12].mxu0 %vm305_vm3, %v2925_v49 }
 0xbc5   :  { %2777 = vmatpush3.bf16.msra.mxu0 %v2774_v58 }
 0xbc6   :  { %2664 = vmatmul.mubr.msk.f32.vlgmr.msra.gmra.mrb[8].mxu1 %vm305_vm3, %v2925_v49  ;;  %v2778_v49 = vpack.c.bf16 %v1474_v60, %v1473_v59 }
 0xbc8   :  { %2779 = vmatprep.subr.bf16.mxu1 %v2778_v49 }
 0xbc9   :  { %2781 = vmatpush3.bf16.msra.mxu1 %v2778_v49 }
 0xc97   :  { %v1360_v61 = vpop.f32.mrb[12].mxu0 }
 0xc98   :  { %v1436_v62 = vmul.f32 0.0625, %v1360_v61  ;;  %v2658_v63 = vpop.f32.mrb[13].mxu0 }
 0xc99   :  { %v1432_v14 = vpop.f32.mrb[8].mxu1 }
 0xc9a   :  { %v1438_v0 = vmul.f32 %v1436_v62, %v1436_v62  ;;  %v1437_v1 = vmul.f32 0.0625, %v1432_v14  ;;  %v2665_v2 = vpop.f32.mrb[9].mxu1  ;;  %v1444_v6 = vrot.slane %v1436_v62, %v3086_v24 }
 0xc9c   :  { %v1439_v3 = vsub.f32 %v1437_v1, %v1438_v0  ;;  %v1445_v8 = vsub.f32 %v1290_v51, %v1444_v6  ;;  %v1446_v13 = vsub.f32 %v1291_v50, %v1444_v6 }
 0xc9e   :  { %v1440_v4 = vmax.f32 %v1439_v3, 0.0 }
 0xca0   :  { %v1447_v5 = vadd.f32 1e-05, %v1440_v4 }
 0xca2   :  { %2871 = vrsqrt.f32 %v1447_v5 }
 0xcac   :  { %v2872_v7 = vpop.eup %2871 }
 0xcad   :  { %v1452_v15 = vrot.slane %v2872_v7, %v3086_v24 }
 0xcaf   :  { %v1453_v17 = vmul.f32 %v1452_v15, %v1445_v8  ;;  %v1454_v18 = vmul.f32 %v1452_v15, %v1446_v13 }
 0xcb1   :  { %v1461_v20 = vmul.f32 %v2464_v16, %v1453_v17  ;;  %v1462_v21 = vmul.f32 %v2464_v16, %v1454_v18 }
 0xcb3   :  { %v1469_v22 = vadd.f32 %v2465_v19, %v1461_v20  ;;  %v1470_v12 = vadd.f32 %v2465_v19, %v1462_v21 }
 0xcb5   :  { %2670 = vmatprep.mubr.msk.f32.mxu0 %vm305_vm3, %v1469_v22 }
 0xcb6   :  { %2671 = vmatmul.mubr.msk.f32.vlgmr.msra.gmra.mrb[14].mxu0 %vm305_vm3, %v1470_v12 }
 0xd89   :  { %v3236_v25 = vpop.f32.mrb[14].mxu0 }
 0xd8a   :  { %v3238_v23 = vpop.f32.mrb[15].mxu0 }
 0xd8b   :  { %v2832_v10 = vpack.i.bf16 %v3236_v25, %v3238_v23  ;;  %v2782_v11 = vpack.c.bf16 %v3236_v25, %v3238_v23  ;;  %2677 = vmatprep.mubr.msk.f32.mxu1 %vm305_vm3, %v3238_v23 }
 0xd8c   :  { %2678 = vmatmul.mubr.msk.f32.vlgmr.msra.gmra.mrb[10].mxu1 %vm305_vm3, %v3236_v25 }
 0xd8d   :  { %2783 = vmatprep.subr.bf16.mxu0 %v2782_v11 }
 0xd8e   :  { %2785 = vmatpush3.bf16.msra.mxu0 %v2782_v11 }
 0xe5f   :  { %v2679_v26 = vpop.f32.mrb[10].mxu1 }
 0xe60   :  { %v1629_v27 = vpop.f32.mrb[11].mxu1 }
 0xe61   :  { %1795 = vrot.lane.b32.xlu1 %v1629_v27, %s2919_s29 }
 0xe65   :  { %1797 = vrot.lane.b32.xlu1 %v2679_v26, %s2919_s29 }
 0xe69   :  { %1834 = vperm.xlu1 %2830, %v1629_v27  }
 0xe6d   :  { %1838 = vperm.xlu1 %2830, %v2679_v26  }
 0xe71   :  { %2831 = vset.pattern.permute.xlu1 %v2917_v9 }
 0xe72   :  { %1672 = vperm.xlu1 %2831, %v1629_v27  }
 0xe76   :  { %1677 = vperm.xlu1 %2831, %v2679_v26  }
 0xed3   :  { %v1796_v28 = vpop.permute.xlu1 %1795 }
 0xed4   :  { %1801 = vxpose.xlu0.b32.start [1/2] (short) (narrow) %v1796_v28, 8 }
 0xed7   :  { %v1798_v29 = vpop.permute.xlu1 %1797 }
 0xed8   :  { %1802 = vxpose.xlu0.b32.end [2/2] (short) (narrow) %v1798_v29, 8 }
 0xee8   :  { %v1835_v31 = vpop.permute.xlu1 %1834 }
 0xeec   :  { %v1839_v37 = vpop.permute.xlu1 %1838 }
 0xef1   :  { %v1673_v46 = vpop.permute.xlu1 %1672 }
 0xef5   :  { %v1678_v47 = vpop.permute.xlu1 %1677 }
 0xf54   :  { %v1817_v34 = vpop.trf.xlu0 }
 0xf55   :  { %v1844_v36 = vrot.slane %v1817_v34, %v3086_v24 }
 0xf57   :  { %v1845_v38 = vadd.f32 %v1844_v36, %v1835_v31  ;;  %v1846_v39 = vadd.f32 %v1844_v36, %v1839_v37  ;;  %v1982_v36 = vld [vmem:[%s3372_s17] sm:$0xff]  ;;  %v1983_v37 = vld [vmem:[%s3372_s17 + $0x8] sm:$0xff] }
 0xf59   :  { %v1847_v30 = vmul.f32 0.2, %v1845_v38  ;;  %v1848_v40 = vmul.f32 0.2, %v1846_v39 }
 0xf5b   :  { %v1849_v41 = vmax.f32 %v1845_v38, %v1847_v30  ;;  %v1850_v42 = vmax.f32 %v1846_v39, %v1848_v40  ;;  %v2790_v38 = vpack.c.bf16 %v1983_v37, %v1982_v36  ;;  %v2474_v39 = vld [vmem:[%s3371_s16] ss:$0 sm:$0xff] }
 0xf5d   :  { %v1851_v43 = vadd.f32 %v3094_v33, %v1849_v41  ;;  %v1852_v9 = vadd.f32 %v3092_v32, %v1850_v42  ;;  %2791 = vmatprep.subr.bf16.mxu0 %v2790_v38 }
 0xf5f   :  { %v1853_v44 = vsel %vm305_vm3, %v1851_v43, -inf  ;;  %v1856_v45 = vsel %vm305_vm3, %v1852_v9, -inf }
 0xf60   :  { %1854 = vmax.xlane.f32.xlu1 %v1853_v44  ;;  %1857 = vmax.xlane.f32.xlu0 %v1856_v45 }
 0xf93   :  { %1638 = vxpose.xlu1.b32.start [1/2] (short) (narrow) %v1629_v27, 8 }
 0xf97   :  { %1639 = vxpose.xlu1.b32.end [2/2] (short) (narrow) %v2679_v26, 8 }
 0xfed   :  { %v1855_v35 = vpop.xlane.xlu1 %1854  ;;  %v1858_v50 = vpop.xlane.xlu0 %1857 }
 0xfee   :  { %v1859_v48 = vsub.f32 %v1851_v43, %v1855_v35  ;;  %v1860_v53 = vsub.f32 %v1852_v9, %v1858_v50  ;;  %v2072_v35 = vld [vmem:[%s3374_s19] sm:$0xff] }
 0xfef   :  { %v2475_v50 = vld [vmem:[%s3373_s18] ss:$0 sm:$0xff] }
 0xff0   :  { %v1861_v54 = vmul.f32 1.442695, %v1859_v48  ;;  %v1863_v59 = vmul.f32 1.442695, %v1860_v53 }
 0xff2   :  { %2873 = vpow2.f32 %v1861_v54 }
 0xff3   :  { %2875 = vpow2.f32 %v1863_v59 }
 0xffc   :  { %v2874_v14 = vpop.eup %2873 }
 0xffd   :  { %v1865_v0 = vsel %vm305_vm3, %v2874_v14, 0.0  ;;  %v2876_v1 = vpop.eup %2875 }
 0xffe   :  { %v1868_v2 = vsel %vm305_vm3, %v2876_v1, 0.0 }
0x1013   :  { %v1654_v51 = vpop.trf.xlu1 }
0x1014   :  { %v1683_v52 = vrot.slane %v1654_v51, %v3086_v24 }
0x1016   :  { %v1684_v55 = vadd.f32 %v1683_v52, %v1673_v46  ;;  %v1685_v56 = vadd.f32 %v1683_v52, %v1678_v47 }
0x1018   :  { %v1686_v57 = vmul.f32 0.2, %v1684_v55  ;;  %v1687_v58 = vmul.f32 0.2, %v1685_v56 }
0x101a   :  { %v1688_v60 = vmax.f32 %v1684_v55, %v1686_v57  ;;  %v1689_v49 = vmax.f32 %v1685_v56, %v1687_v58  ;;  %v2264_v56 = vld [vmem:[%s3395_s11] sm:$0xff]  ;;  %v2265_v58 = vld [vmem:[%s3395_s11 + $0x8] sm:$0xff] }
0x101c   :  { %v1690_v61 = vadd.f32 %v3094_v33, %v1688_v60  ;;  %v1691_v63 = vadd.f32 %v3092_v32, %v1689_v49  ;;  %v2266_v60 = vld [vmem:[%s3395_s11 + $0x10] sm:$0xff] }
0x101e   :  { %v1692_v62 = vsel %vm305_vm3, %v1690_v61, -inf  ;;  %v1695_v24 = vsel %vm305_vm3, %v1691_v63, -inf }
0x101f   :  { %1693 = vmax.xlane.f32.xlu0 %v1692_v62  ;;  %v2478_v62 = vld [vmem:[%s3375_s20] ss:$0 sm:$0xff]  ;;  %s2928_s20 = smov [#allocation2]  }
0x1023   :  { %1696 = vmax.xlane.f32.xlu0 %v1695_v24 }
0x1027   :  { %1866 = vadd.xlane.f32.xlu0 %v1865_v0 }
0x102b   :  { %1869 = vadd.xlane.f32.xlu0 %v1868_v2 }
0x1041   :  { %2833 = vrot.lane.b32.xlu0 %v2832_v10, %s2926_s7  ;;  %s3394_s7 = sld [smem:[#allocation7_spill]] }
0x1047   :  { %v2163_v48 = vld [vmem:[%s3394_s7] sm:$0xff]  ;;  %v2164_v57 = vld [vmem:[%s3394_s7 + $0x8] sm:$0xff]  ;;  %v2165_v59 = vld [vmem:[%s3394_s7 + $0x10] sm:$0xff] }
0x1048   :  { %v2166_v49 = vld [vmem:[%s3394_s7 + $0x18] sm:$0xff] }
0x10ac   :  { %v1694_v33 = vpop.xlane.xlu0 %1693 }
0x10ad   :  { %v1698_v3 = vsub.f32 %v1690_v61, %v1694_v33  ;;  %v2267_v61 = vld [vmem:[%s3395_s11 + $0x18] sm:$0xff] }
0x10af   :  { %v1700_v32 = vmul.f32 1.442695, %v1698_v3 }
0x10b0   :  { %v1697_v4 = vpop.xlane.xlu0 %1696 }
0x10b1   :  { %2877 = vpow2.f32 %v1700_v32  ;;  %v1699_v5 = vsub.f32 %v1691_v63, %v1697_v4 }
0x10b3   :  { %v1702_v6 = vmul.f32 1.442695, %v1699_v5 }
0x10b4   :  { %v1867_v7 = vpop.xlane.xlu0 %1866 }
0x10b5   :  { %2879 = vpow2.f32 %v1702_v6 }
0x10b6   :  { %2881 = vrcp.f32 %v1867_v7 }
0x10b8   :  { %v1870_v8 = vpop.xlane.xlu0 %1869 }
0x10b9   :  { %2883 = vrcp.f32 %v1870_v8 }
0x10bb   :  { %v2878_v13 = vpop.eup %2877 }
0x10bc   :  { %v2834_v15 = vpop.permute.xlu0 %2833  ;;  %v1704_v16 = vsel %vm305_vm3, %v2878_v13, 0.0 }
0x10bd   :  { %v2836_v17 = vunpack.i.h.bf16 %v2834_v15  ;;  %v2835_v18 = vunpack.i.l.bf16 %v2834_v15  ;;  %1705 = vadd.xlane.f32.xlu1 %v1704_v16 }
0x10bf   :  { %v2880_v19 = vpop.eup %2879  ;;  %v2786_v20 = vpack.c.bf16 %v2836_v17, %v2835_v18 }
0x10c0   :  { %v2882_v21 = vpop.eup %2881  ;;  %v1707_v22 = vsel %vm305_vm3, %v2880_v19, 0.0 }
0x10c1   :  { %1708 = vadd.xlane.f32.xlu0 %v1707_v22  ;;  %2787 = vmatprep.subr.bf16.mxu1 %v2786_v20  ;;  %v1873_v12 = vmul.f32 %v2882_v21, %v2874_v14 }
0x10c2   :  { %2789 = vmatpush3.bf16.msra.mxu1 %v2786_v20 }
0x10c3   :  { %v2884_v25 = vpop.eup %2883  ;;  %2691 = vmatprep.mubr.msk.f32.mxu1 %vm305_vm3, %v1873_v12  ;;  %2701 = vmatprep.subr.mxu1 %v2072_v35 }
0x10c4   :  { %v1874_v23 = vmul.f32 %v2884_v25, %v2876_v1 }
0x10c6   :  { %2692 = vmatmul.mubr.msk.f32.vlgmr.msra.gmra.mrb[12].mxu1 %vm305_vm3, %v1874_v23 }
0x10c7   :  { %2702 = vmatpush3.msra.mxu1 %v2072_v35 }
0x114a   :  { %v1706_v10 = vpop.xlane.xlu1 %1705 }
0x114b   :  { %2885 = vrcp.f32 %v1706_v10 }
0x114e   :  { %v1709_v11 = vpop.xlane.xlu0 %1708 }
0x114f   :  { %2887 = vrcp.f32 %v1709_v11 }
0x1155   :  { %v2886_v26 = vpop.eup %2885 }
0x1156   :  { %v1712_v27 = vmul.f32 %v2886_v26, %v2878_v13 }
0x1158   :  { %2684 = vmatprep.mubr.msk.f32.mxu0 %vm305_vm3, %v1712_v27 }
0x1159   :  { %v2888_v28 = vpop.eup %2887 }
0x115a   :  { %v1713_v29 = vmul.f32 %v2888_v28, %v2880_v19 }
0x115c   :  { %2685 = vmatmul.mubr.msk.f32.vlgmr.msra.gmra.mrb[16].mxu0 %vm305_vm3, %v1713_v29 }
0x115d   :  { %2793 = vmatpush3.bf16.msra.mxu0 %v2790_v38 }
0x1199   :  { %v2693_v31 = vpop.f32.mrb[12].mxu1 }
0x119a   :  { %1966 = vrot.lane.b32.xlu0 %v2693_v31, %s2927_s8  ;;  %v1953_v34 = vpop.f32.mrb[13].mxu1 }
0x119b   :  { %1964 = vrot.lane.b32.xlu1 %v1953_v34, %s2927_s8 }
0x120c   :  { %v1967_v30 = vpop.permute.xlu0 %1966 }
0x120d   :  { %v1965_v41 = vpop.permute.xlu1 %1964 }
0x122f   :  { %v2686_v40 = vpop.f32.mrb[16].mxu0 }
0x1230   :  { %v1971_v42 = vsel %vm1279_vm5, %v2686_v40, %v1967_v30  ;;  %v1786_v43 = vpop.f32.mrb[17].mxu0 }
0x1231   :  { %v1979_v9 = vadd.f32 %v2474_v39, %v1971_v42  ;;  %v1970_v44 = vsel %vm1279_vm5, %v1786_v43, %v1965_v41 }
0x1232   :  { %v1978_v45 = vadd.f32 %v2474_v39, %v1970_v44 }
0x1233   :  { %v1981_v47 = vmax.f32 %v1979_v9, 0.0 }
0x1234   :  { %v1980_v46 = vmax.f32 %v1978_v45, 0.0 }
0x1236   :  { %2698 = vmatprep.mubr.msk.f32.mxu0 %vm305_vm3, %v1980_v46 }
0x1237   :  { %2699 = vmatmul.mubr.msk.f32.vlgmr.msra.gmra.mrb[18].mxu0 %vm305_vm3, %v1981_v47 }
0x1238   :  { %2710 = vmatprep.mubr.msk.f32.mxu0 %vm305_vm3, %v2163_v48 }
0x130a   :  { %v2700_v51 = vpop.f32.mrb[18].mxu0 }
0x130b   :  { %v2069_v52 = vadd.f32 %v2700_v51, %v2475_v50  ;;  %v2063_v53 = vpop.f32.mrb[19].mxu0 }
0x130c   :  { %v2064_v54 = vadd.f32 %v2475_v50, %v2063_v53 }
0x130e   :  { %v2794_v55 = vpack.c.bf16 %v2069_v52, %v2064_v54  ;;  %2703 = vmatprep.mubr.msk.f32.mxu1 %vm1279_vm5, %v2064_v54 }
0x130f   :  { %2704 = vmatmul.mubr.msk.f32.vlgmr.msra.gmra.mrb[14].mxu1 %vm1279_vm5, %v2069_v52 }
0x1310   :  { %2795 = vmatprep.subr.bf16.mxu0 %v2794_v55  ;;  %2799 = vmatprep.subr.bf16.mxu1 %v2794_v55 }
0x1311   :  { %2797 = vmatpush3.bf16.msra.mxu0 %v2794_v55  ;;  %2801 = vmatpush3.bf16.msra.mxu1 %v2794_v55 }
0x1312   :  { %2720 = vmatprep.mubr.msk.f32.mxu1 %vm305_vm3, %v2264_v56 }
0x1314   :  { %2711 = vmatmul.mubr.msk.f32.vlgmr.msra.gmra.mrb[20].mxu0 %vm305_vm3, %v2164_v57  ;;  %2721 = vmatmul.mubr.msk.f32.vlgmr.msra.gmra.mrb[16].mxu1 %vm305_vm3, %v2265_v58 }
0x1315   :  { %2713 = vmatprep.mubr.msk.f32.mxu0 %vm305_vm3, %v2165_v59  ;;  %2723 = vmatprep.mubr.msk.f32.mxu1 %vm305_vm3, %v2266_v60 }
0x1318   :  { %2714 = vmatmul.mubr.msk.f32.gmra.mrb[22].mxu0 %vm305_vm3, %v2166_v49  ;;  %2724 = vmatmul.mubr.msk.f32.gmra.mrb[18].mxu1 %vm305_vm3, %v2267_v61 }
0x13e2   :  { %v2705_v63 = vpop.f32.mrb[14].mxu1 }
0x13e3   :  { %v2158_v24 = vadd.f32 %v2705_v63, %v2478_v62  ;;  %v2152_v14 = vpop.f32.mrb[15].mxu1 }
0x13e4   :  { %v2153_v0 = vadd.f32 %v2478_v62, %v2152_v14 }
0x13e5   :  { %2162 = vst.msk [vmem:[%s3377_s22 + $0x8] sm:$0xff] %vm83_vm1, %v2158_v24 }
0x13e6   :  { %2161 = vst.msk [vmem:[%s3377_s22] sm:$0xff] %vm83_vm1, %v2153_v0  ;;  %s2427_s22 = sshll.u32 %s2928_s20, 4  ;;  %s2428_s22 = int_to_ptr.vmem [resolvable:$true] %s2427_s22 }
0x13e7   :  { %v2712_v1 = vpop.f32.mrb[20].mxu0  ;;  %v2722_v2 = vpop.f32.mrb[16].mxu1  ;;  %s2893_s17 = scalar_lea.vmem %s2428_s22, 16  ;;  %s2897_s24 = scalar_lea.vmem %s2428_s22, 32 }
0x13e8   :  { %v2366_v33 = vmul.f32 %v2722_v2, %v2712_v1  ;;  %v2245_v3 = vpop.f32.mrb[21].mxu0  ;;  %v2346_v32 = vpop.f32.mrb[17].mxu1  ;;  %p2894_p0 = scmp.ne.s32.totalorder %s2428_s22, %s2893_s17  ;;  %p2898_p1 = scmp.lt.s32.totalorder %s2428_s22, %s2428_s22 }
0x13e9   :  { %v2365_v4 = vmul.f32 %v2346_v32, %v2245_v3  ;;  %p2899_p2 = scmp.lt.s32.totalorder %s2897_s24, %s2893_s17 }
0x13ea   :  { %v2372_v5 = vsel %vm1279_vm5, %v2366_v33, 0.0 }
0x13eb   :  { %v2715_v6 = vpop.f32.mrb[22].mxu0  ;;  %v2725_v7 = vpop.f32.mrb[18].mxu1  ;;  %2373 = vadd.xlane.f32.xlu0 %v2372_v5  ;;  %v2369_v8 = vsel %vm1279_vm5, %v2365_v4, 0.0  ;;  %p2900_p3 = por %p2899_p2, %p2898_p1 }
0x13ec   :  { %v2368_v13 = vmul.f32 %v2725_v7, %v2715_v6  ;;  %v2255_v15 = vpop.f32.mrb[23].mxu0  ;;  %2370 = vadd.xlane.f32.xlu1 %v2369_v8  ;;  %v2356_v16 = vpop.f32.mrb[19].mxu1 }
0x13ed   :  { %v2367_v17 = vmul.f32 %v2356_v16, %v2255_v15  ;;  %p2901_p4 = pnand %p2900_p3, %p2894_p0 }
0x13ee   :  { %v2378_v19 = vsel %vm1279_vm5, %v2368_v13, 0.0 }
0x13ef   :  { %v2375_v18 = vsel %vm1279_vm5, %v2367_v17, 0.0 }
0x13f0   :  { %2376 = vadd.xlane.f32.xlu1 %v2375_v18 }
0x13f4   :  { %2379 = vadd.xlane.f32.xlu1 %v2378_v19 }
0x1478   :  { %v2374_v21 = vpop.xlane.xlu0 %2373 }
0x1479   :  { %v2371_v20 = vpop.xlane.xlu1 %2370 }
0x147a   :  { %2381 = vxpose.xlu1.b32.start [1/4] (short) (narrow) %v2371_v20, 8 }
0x147d   :  { %v2377_v22 = vpop.xlane.xlu1 %2376 }
0x147e   :  { %2382 = vxpose.xlu1.b32.cont [2/4] (short) (narrow) %v2374_v21, 8 }
0x1481   :  { %v2380_v12 = vpop.xlane.xlu1 %2379 }
0x1482   :  { %2383 = vxpose.xlu1.b32.cont [3/4] (short) (narrow) %v2377_v22, 8 }
0x1486   :  { %2384 = vxpose.xlu1.b32.end [4/4] (short) (narrow) %v2380_v12, 8 }
0x14fa   :  { %v2397_v25 = vpop.trf.xlu1 }
0x14fb   :  { %v2489_v23 = vmul.f32 -1.442695, %v2397_v25 }
0x14fd   :  { %2889 = vpow2.f32 %v2489_v23 }
0x1507   :  { %v2890_v10 = vpop.eup %2889 }
0x1508   :  { %v2416_v11 = vadd.f32 1.0, %v2890_v10 }
0x150a   :  { %2891 = vrcp.f32 %v2416_v11 }
0x1514   :  { %v2892_v26 = vpop.eup %2891 }
0x1515   :  { %2420 = vst.msk [vmem:[#allocation2] sm:$0x1] %vm2419_vm6, %v2892_v26 }
0x1516   :  { %2904 = shalt.err (!%p2901_p4)
}
0x1517   :  { %s2905_s7 = scalar_lea.hbm %s3376_s21, 16 }
0x1518   :  { %p2906_p5 = scmp.ne.s32.totalorder %s3376_s21, %s2905_s7  ;;  %p2909_p6 = scmp.lt.u32.totalorder %s2905_s7, %s3376_s21 }
0x151a   :  { %p2911_p7 = pnand %p2909_p6, %p2906_p5 }
0x151c   :  { %2914 = shalt.err (!%p2911_p7)
}
0x151d   :  { %2430 = dma.vmem_to_hbm [thread:$0]  %s2428_s22, 16, %s3376_s21, [#allocation3]  }
0x151e   :  { %2915 = dma.done.wait [#allocation3], 16  }
0x151f   :  { %2916 = vsyncadd [#allocation3], 4294967280 }
0x1520   :  { %2438 = vsyncpa [#allocation3], 1 }

</bundles_post_ra>
